<compile_context>
chip_gen: v7x
topology: tpu7x:2x2x1
jax: 0.10.0
libtpu: 0.0.40
codegen_flags: <defaults>
</compile_context>

<pallas_src>
import functools

import jax
import jax.numpy as jnp
import numpy as np
from jax.experimental import pallas as pl
from jax.experimental.pallas import tpu as pltpu

KH = KW = 8                               # kernel_size
STRIDE = 2
PADDING = 3
KS = KH // STRIDE                         # 4 : per-parity sub-kernel size
SUBPAD = (KH - 1 - PADDING) // STRIDE     # 2 : per-parity pad of the un-dilated input
TAPS = KS + STRIDE - 1                    # 5 : fused tap window shared by all parities


# ----------------------------- Pallas kernel -------------------------------
def _deconv_kernel(w_ref, b_ref, x_ref, o_ref, *, offsets, mt, c_in):
    # w_ref : (P, K)            parity-fused weights, P = 4*C_out, K = 25*C_in (resident)
    # b_ref : (P, 1)            bias column replicated over parities          (resident)
    # x_ref : (1, 1, C_in, LT)  flattened padded input row-tile (row-major h*Wp + w)
    # o_ref : (1, 1, P, MT)     flat outputs of all 4 parities for this tile (lane-dense)
    x = x_ref[0, 0]                                    # (C_in, LT) in VMEM
    p = o_ref.shape[2]
    acc = jnp.zeros((p, mt), jnp.float32)
    # In-VMEM im2col: each of the 25 taps is a static lane-shifted view of the
    # flat input tile; the fused (P, 25*C_in) GEMM is applied as 25 rank-C_in
    # MXU updates (no patch tensor in HBM, no in-kernel reshape/concat).
    for t, off in enumerate(offsets):
        acc += jnp.dot(w_ref[:, t * c_in:(t + 1) * c_in],
                       x[:, off:off + mt],
                       preferred_element_type=jnp.float32)
    o_ref[0, 0] = (acc + b_ref[...]).astype(o_ref.dtype)


# --------------------------- tiling heuristics ------------------------------
def _vmem_need_bytes(th, wp, c_in, c_out):
    k = TAPS * TAPS * c_in
    p = STRIDE * STRIDE * c_out
    lt = (th + TAPS) * wp
    mt = th * wp
    # double-buffered in/out blocks + f32 accumulator + a couple of slice
    # temporaries + resident weights/bias (double-buffered, tiny).
    return 4 * (2 * c_in * lt + 2 * p * mt + p * mt + 2 * c_in * mt + 2 * (p * k + p))


def _pick_row_tile(n, h, wp, c_in, c_out, budget=20 << 20):
    best = 1
    for th in range(1, h + 1):
        if h % th:
            continue
        if n == 1 and h > 1 and h // th < 2:
            continue  # keep >= 2 grid steps so both v7x TensorCores get work
        if _vmem_need_bytes(th, wp, c_in, c_out) <= budget:
            best = th
    return best


# ------------------------------ forward -------------------------------------
def re_conv_823_forward(x, weight, bias):
    """ConvTranspose2d(k=8, s=2, p=3) forward.

    x      : (N, C_in, H, W)
    weight : (C_in, C_out, 8, 8)   -- PyTorch ConvTranspose2d weight layout
    bias   : (C_out,) or None
    returns: (N, C_out, 2H, 2W)    -- NCHW, matching PyTorch
    """
    N, C_in, H, W = x.shape
    C_out = weight.shape[1]
    Wp = W + 2 * SUBPAD                     # padded width (flat row stride)
    K = TAPS * TAPS * C_in                  # 25*C_in, intentionally left unpadded
    P = STRIDE * STRIDE * C_out             # 4*C_out fused GEMM rows

    # Parity-fused weights: equivalent forward-conv kernel (flipped, in/out
    # swapped), each parity's 4x4 sub-kernel zero-padded into the shared 5x5
    # tap grid, rows ordered (py, px, c_out), K ordered (dy, dx, c_in).
    w_conv = jnp.transpose(jnp.flip(weight, axis=(2, 3)), (2, 3, 0, 1))  # (8,8,Cin,Cout)
    rows = []
    for py in range(STRIDE):
        for px in range(STRIDE):
            wp_sub = w_conv[py::STRIDE, px::STRIDE]                      # (4,4,Cin,Cout)
            wp_sub = jnp.pad(wp_sub, ((py, 1 - py), (px, 1 - px), (0, 0), (0, 0)))
            rows.append(jnp.transpose(wp_sub, (3, 0, 1, 2)).reshape(C_out, K))
    w_all = jnp.concatenate(rows, axis=0).astype(x.dtype)                # (P, K)

    b = bias if bias is not None else jnp.zeros((C_out,), x.dtype)
    b_all = jnp.tile(b, STRIDE * STRIDE).reshape(P, 1).astype(x.dtype)   # (P, 1)

    # Row-tile size from a VMEM budget; TH divides H so tiles cover H exactly.
    TH = _pick_row_tile(N, H, Wp, C_in, C_out)
    HT = H // TH
    LT = (TH + TAPS) * Wp                   # TH+5 padded rows, flattened
    MT = TH * Wp                            # flat output positions per tile

    # Zero-padded input (2 top/left, 2 right, 3 bottom: +1 row absorbs the
    # flat-index spill of the garbage gap columns), cut into row tiles with a
    # 5-row halo and flattened row-major so every tap is a pure lane-offset
    # slice inside the kernel.
    x_pad = jnp.pad(x, ((0, 0), (0, 0), (SUBPAD, SUBPAD + 1), (SUBPAD, SUBPAD)))
    x_tiles = jnp.stack(
        [x_pad[:, :, ht * TH: ht * TH + TH + TAPS, :] for ht in range(HT)], axis=1)
    x_tiles = x_tiles.reshape(N, HT, C_in, LT)

    offsets = tuple(dy * Wp + dx for dy in range(TAPS) for dx in range(TAPS))
    kernel = functools.partial(_deconv_kernel, offsets=offsets, mt=MT, c_in=C_in)

    need = _vmem_need_bytes(TH, Wp, C_in, C_out)
    vmem_limit = int(min(48 << 20, max(16 << 20, 2 * need)))

    out = pl.pallas_call(
        kernel,
        out_shape=jax.ShapeDtypeStruct((N, HT, P, MT), x.dtype),
        grid=(N, HT),
        in_specs=[
            pl.BlockSpec((P, K), lambda n, t: (0, 0)),                 # resident weights
            pl.BlockSpec((P, 1), lambda n, t: (0, 0)),                 # resident bias
            pl.BlockSpec((1, 1, C_in, LT), lambda n, t: (n, t, 0, 0)),
        ],
        out_specs=pl.BlockSpec((1, 1, P, MT), lambda n, t: (n, t, 0, 0)),
        compiler_params=pltpu.CompilerParams(
            dimension_semantics=("parallel", "parallel"),
            vmem_limit_bytes=vmem_limit),
    )(w_all, b_all, x_tiles)

    # Drop the Wp-W gap columns and interleave parities back to NCHW:
    #   y[n, c, 2*(ht*TH+hl)+py, 2*w+px] = out[n, ht, py, px, c, hl, w]
    out = out.reshape(N, HT, STRIDE, STRIDE, C_out, TH, Wp)[..., :W]
    y = jnp.transpose(out, (0, 4, 1, 5, 2, 6, 3))      # (n, c, ht, hl, py, w, px)
    return y.reshape(N, C_out, STRIDE * H, STRIDE * W)


# ------------------------------- main ---------------------------------------
if __name__ == "__main__":
    key = jax.random.PRNGKey(0)
    kx, kw, kb = jax.random.split(key, 3)

    N, C_in, C_out, H, W = 2, 4, 8, 16, 16
    x = jax.random.normal(kx, (N, C_in, H, W), jnp.float32)
    fan = C_in * KH * KW
    weight = jax.random.normal(kw, (C_in, C_out, KH, KW), jnp.float32) / np.sqrt(fan)
    bias = jax.random.normal(kb, (C_out,), jnp.float32) * 0.1

    fwd = jax.jit(re_conv_823_forward)
    y = fwd(x, weight, bias)
    jax.block_until_ready(y)

    # reference: lhs-dilated regular conv (== ConvTranspose2d semantics)
    w_oihw = jnp.transpose(jnp.flip(weight, axis=(2, 3)), (1, 0, 2, 3))
    y_ref = jax.lax.conv_general_dilated(
        x, w_oihw, window_strides=(1, 1),
        padding=[(KH - 1 - PADDING, KH - 1 - PADDING)] * 2,
        lhs_dilation=(STRIDE, STRIDE),
        dimension_numbers=("NCHW", "OIHW", "NCHW"),
    ) + bias.reshape(1, C_out, 1, 1)

    assert y.shape == (N, C_out, 2 * H, 2 * W), y.shape
    np.testing.assert_allclose(np.asarray(y), np.asarray(y_ref), atol=1e-4, rtol=1e-4)
    print("KERNEL_OK")
</pallas_src>

<mosaic_0001>
module attributes {stable_mosaic.version = 11 : i64} {
  func.func @_deconv_kernel(%arg0: i32, %arg1: i32, %arg2: memref<32x100xf32, #tpu.memory_space<vmem>>, %arg3: memref<32x1xf32, #tpu.memory_space<vmem>>, %arg4: memref<1x1x4x420xf32, #tpu.memory_space<vmem>>, %arg5: memref<1x1x32x320xf32, #tpu.memory_space<vmem>>) attributes {dimension_semantics = [#tpu.dimension_semantics<parallel>, #tpu.dimension_semantics<parallel>], iteration_bounds = array<i64: 2, 1>, scalar_prefetch = 0 : i64, scratch_operands = 0 : i64, tpu.core_type = #tpu.core_type<tc>, window_params = [{pipeline_mode = #tpu.pipeline_mode<synchronous>, transform_indices = @transform_0, window_bounds = array<i64: 32, 100>}, {pipeline_mode = #tpu.pipeline_mode<synchronous>, transform_indices = @transform_1, window_bounds = array<i64: 32, 1>}, {transform_indices = @transform_2, window_bounds = array<i64: 1, 1, 4, 420>}, {transform_indices = @transform_3, window_bounds = array<i64: 1, 1, 32, 320>}]} {
    %c0 = arith.constant 0 : index
    %c0_0 = arith.constant 0 : index
    %c0_1 = arith.constant 0 : index
    %c0_2 = arith.constant 0 : index
    %0 = vector.load %arg4[%c0, %c0_0, %c0_1, %c0_2] : memref<1x1x4x420xf32, #tpu.memory_space<vmem>>, vector<1x1x4x420xf32>
    %1 = vector.shape_cast %0 : vector<1x1x4x420xf32> to vector<4x420xf32>
    %cst = arith.constant 0.000000e+00 : f32
    %2 = vector.broadcast %cst : f32 to vector<32x320xf32>
    %c0_3 = arith.constant 0 : index
    %c0_4 = arith.constant 0 : index
    %3 = vector.load %arg2[%c0_3, %c0_4] : memref<32x100xf32, #tpu.memory_space<vmem>>, vector<32x4xf32>
    %4 = vector.extract_strided_slice %1 {offsets = [0, 0], sizes = [4, 320], strides = [1, 1]} : vector<4x420xf32> to vector<4x320xf32>
    %cst_5 = arith.constant dense<0.000000e+00> : vector<32x320xf32>
    %5 = tpu.matmul %3, %4, %cst_5 {dimension_numbers = #tpu.dot_dimension_numbers<[1], [0], [0], [1], [0, 0, 1, 1], [], []>} : vector<32x4xf32>, vector<4x320xf32>, vector<32x320xf32> -> vector<32x320xf32>
    %6 = arith.addf %2, %5 : vector<32x320xf32>
    %c0_6 = arith.constant 0 : index
    %c4 = arith.constant 4 : index
    %7 = vector.load %arg2[%c0_6, %c4] : memref<32x100xf32, #tpu.memory_space<vmem>>, vector<32x4xf32>
    %8 = vector.extract_strided_slice %1 {offsets = [0, 1], sizes = [4, 320], strides = [1, 1]} : vector<4x420xf32> to vector<4x320xf32>
    %cst_7 = arith.constant dense<0.000000e+00> : vector<32x320xf32>
    %9 = tpu.matmul %7, %8, %cst_7 {dimension_numbers = #tpu.dot_dimension_numbers<[1], [0], [0], [1], [0, 0, 1, 1], [], []>} : vector<32x4xf32>, vector<4x320xf32>, vector<32x320xf32> -> vector<32x320xf32>
    %10 = arith.addf %6, %9 : vector<32x320xf32>
    %c0_8 = arith.constant 0 : index
    %c8 = arith.constant 8 : index
    %11 = vector.load %arg2[%c0_8, %c8] : memref<32x100xf32, #tpu.memory_space<vmem>>, vector<32x4xf32>
    %12 = vector.extract_strided_slice %1 {offsets = [0, 2], sizes = [4, 320], strides = [1, 1]} : vector<4x420xf32> to vector<4x320xf32>
    %cst_9 = arith.constant dense<0.000000e+00> : vector<32x320xf32>
    %13 = tpu.matmul %11, %12, %cst_9 {dimension_numbers = #tpu.dot_dimension_numbers<[1], [0], [0], [1], [0, 0, 1, 1], [], []>} : vector<32x4xf32>, vector<4x320xf32>, vector<32x320xf32> -> vector<32x320xf32>
    %14 = arith.addf %10, %13 : vector<32x320xf32>
    %c0_10 = arith.constant 0 : index
    %c12 = arith.constant 12 : index
    %15 = vector.load %arg2[%c0_10, %c12] : memref<32x100xf32, #tpu.memory_space<vmem>>, vector<32x4xf32>
    %16 = vector.extract_strided_slice %1 {offsets = [0, 3], sizes = [4, 320], strides = [1, 1]} : vector<4x420xf32> to vector<4x320xf32>
    %cst_11 = arith.constant dense<0.000000e+00> : vector<32x320xf32>
    %17 = tpu.matmul %15, %16, %cst_11 {dimension_numbers = #tpu.dot_dimension_numbers<[1], [0], [0], [1], [0, 0, 1, 1], [], []>} : vector<32x4xf32>, vector<4x320xf32>, vector<32x320xf32> -> vector<32x320xf32>
    %18 = arith.addf %14, %17 : vector<32x320xf32>
    %c0_12 = arith.constant 0 : index
    %c16 = arith.constant 16 : index
    %19 = vector.load %arg2[%c0_12, %c16] : memref<32x100xf32, #tpu.memory_space<vmem>>, vector<32x4xf32>
    %20 = vector.extract_strided_slice %1 {offsets = [0, 4], sizes = [4, 320], strides = [1, 1]} : vector<4x420xf32> to vector<4x320xf32>
    %cst_13 = arith.constant dense<0.000000e+00> : vector<32x320xf32>
    %21 = tpu.matmul %19, %20, %cst_13 {dimension_numbers = #tpu.dot_dimension_numbers<[1], [0], [0], [1], [0, 0, 1, 1], [], []>} : vector<32x4xf32>, vector<4x320xf32>, vector<32x320xf32> -> vector<32x320xf32>
    %22 = arith.addf %18, %21 : vector<32x320xf32>
    %c0_14 = arith.constant 0 : index
    %c20 = arith.constant 20 : index
    %23 = vector.load %arg2[%c0_14, %c20] : memref<32x100xf32, #tpu.memory_space<vmem>>, vector<32x4xf32>
    %24 = vector.extract_strided_slice %1 {offsets = [0, 20], sizes = [4, 320], strides = [1, 1]} : vector<4x420xf32> to vector<4x320xf32>
    %cst_15 = arith.constant dense<0.000000e+00> : vector<32x320xf32>
    %25 = tpu.matmul %23, %24, %cst_15 {dimension_numbers = #tpu.dot_dimension_numbers<[1], [0], [0], [1], [0, 0, 1, 1], [], []>} : vector<32x4xf32>, vector<4x320xf32>, vector<32x320xf32> -> vector<32x320xf32>
    %26 = arith.addf %22, %25 : vector<32x320xf32>
    %c0_16 = arith.constant 0 : index
    %c24 = arith.constant 24 : index
    %27 = vector.load %arg2[%c0_16, %c24] : memref<32x100xf32, #tpu.memory_space<vmem>>, vector<32x4xf32>
    %28 = vector.extract_strided_slice %1 {offsets = [0, 21], sizes = [4, 320], strides = [1, 1]} : vector<4x420xf32> to vector<4x320xf32>
    %cst_17 = arith.constant dense<0.000000e+00> : vector<32x320xf32>
    %29 = tpu.matmul %27, %28, %cst_17 {dimension_numbers = #tpu.dot_dimension_numbers<[1], [0], [0], [1], [0, 0, 1, 1], [], []>} : vector<32x4xf32>, vector<4x320xf32>, vector<32x320xf32> -> vector<32x320xf32>
    %30 = arith.addf %26, %29 : vector<32x320xf32>
    %c0_18 = arith.constant 0 : index
    %c28 = arith.constant 28 : index
    %31 = vector.load %arg2[%c0_18, %c28] : memref<32x100xf32, #tpu.memory_space<vmem>>, vector<32x4xf32>
    %32 = vector.extract_strided_slice %1 {offsets = [0, 22], sizes = [4, 320], strides = [1, 1]} : vector<4x420xf32> to vector<4x320xf32>
    %cst_19 = arith.constant dense<0.000000e+00> : vector<32x320xf32>
    %33 = tpu.matmul %31, %32, %cst_19 {dimension_numbers = #tpu.dot_dimension_numbers<[1], [0], [0], [1], [0, 0, 1, 1], [], []>} : vector<32x4xf32>, vector<4x320xf32>, vector<32x320xf32> -> vector<32x320xf32>
    %34 = arith.addf %30, %33 : vector<32x320xf32>
    %c0_20 = arith.constant 0 : index
    %c32 = arith.constant 32 : index
    %35 = vector.load %arg2[%c0_20, %c32] : memref<32x100xf32, #tpu.memory_space<vmem>>, vector<32x4xf32>
    %36 = vector.extract_strided_slice %1 {offsets = [0, 23], sizes = [4, 320], strides = [1, 1]} : vector<4x420xf32> to vector<4x320xf32>
    %cst_21 = arith.constant dense<0.000000e+00> : vector<32x320xf32>
    %37 = tpu.matmul %35, %36, %cst_21 {dimension_numbers = #tpu.dot_dimension_numbers<[1], [0], [0], [1], [0, 0, 1, 1], [], []>} : vector<32x4xf32>, vector<4x320xf32>, vector<32x320xf32> -> vector<32x320xf32>
    %38 = arith.addf %34, %37 : vector<32x320xf32>
    %c0_22 = arith.constant 0 : index
    %c36 = arith.constant 36 : index
    %39 = vector.load %arg2[%c0_22, %c36] : memref<32x100xf32, #tpu.memory_space<vmem>>, vector<32x4xf32>
    %40 = vector.extract_strided_slice %1 {offsets = [0, 24], sizes = [4, 320], strides = [1, 1]} : vector<4x420xf32> to vector<4x320xf32>
    %cst_23 = arith.constant dense<0.000000e+00> : vector<32x320xf32>
    %41 = tpu.matmul %39, %40, %cst_23 {dimension_numbers = #tpu.dot_dimension_numbers<[1], [0], [0], [1], [0, 0, 1, 1], [], []>} : vector<32x4xf32>, vector<4x320xf32>, vector<32x320xf32> -> vector<32x320xf32>
    %42 = arith.addf %38, %41 : vector<32x320xf32>
    %c0_24 = arith.constant 0 : index
    %c40 = arith.constant 40 : index
    %43 = vector.load %arg2[%c0_24, %c40] : memref<32x100xf32, #tpu.memory_space<vmem>>, vector<32x4xf32>
    %44 = vector.extract_strided_slice %1 {offsets = [0, 40], sizes = [4, 320], strides = [1, 1]} : vector<4x420xf32> to vector<4x320xf32>
    %cst_25 = arith.constant dense<0.000000e+00> : vector<32x320xf32>
    %45 = tpu.matmul %43, %44, %cst_25 {dimension_numbers = #tpu.dot_dimension_numbers<[1], [0], [0], [1], [0, 0, 1, 1], [], []>} : vector<32x4xf32>, vector<4x320xf32>, vector<32x320xf32> -> vector<32x320xf32>
    %46 = arith.addf %42, %45 : vector<32x320xf32>
    %c0_26 = arith.constant 0 : index
    %c44 = arith.constant 44 : index
    %47 = vector.load %arg2[%c0_26, %c44] : memref<32x100xf32, #tpu.memory_space<vmem>>, vector<32x4xf32>
    %48 = vector.extract_strided_slice %1 {offsets = [0, 41], sizes = [4, 320], strides = [1, 1]} : vector<4x420xf32> to vector<4x320xf32>
    %cst_27 = arith.constant dense<0.000000e+00> : vector<32x320xf32>
    %49 = tpu.matmul %47, %48, %cst_27 {dimension_numbers = #tpu.dot_dimension_numbers<[1], [0], [0], [1], [0, 0, 1, 1], [], []>} : vector<32x4xf32>, vector<4x320xf32>, vector<32x320xf32> -> vector<32x320xf32>
    %50 = arith.addf %46, %49 : vector<32x320xf32>
    %c0_28 = arith.constant 0 : index
    %c48 = arith.constant 48 : index
    %51 = vector.load %arg2[%c0_28, %c48] : memref<32x100xf32, #tpu.memory_space<vmem>>, vector<32x4xf32>
    %52 = vector.extract_strided_slice %1 {offsets = [0, 42], sizes = [4, 320], strides = [1, 1]} : vector<4x420xf32> to vector<4x320xf32>
    %cst_29 = arith.constant dense<0.000000e+00> : vector<32x320xf32>
    %53 = tpu.matmul %51, %52, %cst_29 {dimension_numbers = #tpu.dot_dimension_numbers<[1], [0], [0], [1], [0, 0, 1, 1], [], []>} : vector<32x4xf32>, vector<4x320xf32>, vector<32x320xf32> -> vector<32x320xf32>
    %54 = arith.addf %50, %53 : vector<32x320xf32>
    %c0_30 = arith.constant 0 : index
    %c52 = arith.constant 52 : index
    %55 = vector.load %arg2[%c0_30, %c52] : memref<32x100xf32, #tpu.memory_space<vmem>>, vector<32x4xf32>
    %56 = vector.extract_strided_slice %1 {offsets = [0, 43], sizes = [4, 320], strides = [1, 1]} : vector<4x420xf32> to vector<4x320xf32>
    %cst_31 = arith.constant dense<0.000000e+00> : vector<32x320xf32>
    %57 = tpu.matmul %55, %56, %cst_31 {dimension_numbers = #tpu.dot_dimension_numbers<[1], [0], [0], [1], [0, 0, 1, 1], [], []>} : vector<32x4xf32>, vector<4x320xf32>, vector<32x320xf32> -> vector<32x320xf32>
    %58 = arith.addf %54, %57 : vector<32x320xf32>
    %c0_32 = arith.constant 0 : index
    %c56 = arith.constant 56 : index
    %59 = vector.load %arg2[%c0_32, %c56] : memref<32x100xf32, #tpu.memory_space<vmem>>, vector<32x4xf32>
    %60 = vector.extract_strided_slice %1 {offsets = [0, 44], sizes = [4, 320], strides = [1, 1]} : vector<4x420xf32> to vector<4x320xf32>
    %cst_33 = arith.constant dense<0.000000e+00> : vector<32x320xf32>
    %61 = tpu.matmul %59, %60, %cst_33 {dimension_numbers = #tpu.dot_dimension_numbers<[1], [0], [0], [1], [0, 0, 1, 1], [], []>} : vector<32x4xf32>, vector<4x320xf32>, vector<32x320xf32> -> vector<32x320xf32>
    %62 = arith.addf %58, %61 : vector<32x320xf32>
    %c0_34 = arith.constant 0 : index
    %c60 = arith.constant 60 : index
    %63 = vector.load %arg2[%c0_34, %c60] : memref<32x100xf32, #tpu.memory_space<vmem>>, vector<32x4xf32>
    %64 = vector.extract_strided_slice %1 {offsets = [0, 60], sizes = [4, 320], strides = [1, 1]} : vector<4x420xf32> to vector<4x320xf32>
    %cst_35 = arith.constant dense<0.000000e+00> : vector<32x320xf32>
    %65 = tpu.matmul %63, %64, %cst_35 {dimension_numbers = #tpu.dot_dimension_numbers<[1], [0], [0], [1], [0, 0, 1, 1], [], []>} : vector<32x4xf32>, vector<4x320xf32>, vector<32x320xf32> -> vector<32x320xf32>
    %66 = arith.addf %62, %65 : vector<32x320xf32>
    %c0_36 = arith.constant 0 : index
    %c64 = arith.constant 64 : index
    %67 = vector.load %arg2[%c0_36, %c64] : memref<32x100xf32, #tpu.memory_space<vmem>>, vector<32x4xf32>
    %68 = vector.extract_strided_slice %1 {offsets = [0, 61], sizes = [4, 320], strides = [1, 1]} : vector<4x420xf32> to vector<4x320xf32>
    %cst_37 = arith.constant dense<0.000000e+00> : vector<32x320xf32>
    %69 = tpu.matmul %67, %68, %cst_37 {dimension_numbers = #tpu.dot_dimension_numbers<[1], [0], [0], [1], [0, 0, 1, 1], [], []>} : vector<32x4xf32>, vector<4x320xf32>, vector<32x320xf32> -> vector<32x320xf32>
    %70 = arith.addf %66, %69 : vector<32x320xf32>
    %c0_38 = arith.constant 0 : index
    %c68 = arith.constant 68 : index
    %71 = vector.load %arg2[%c0_38, %c68] : memref<32x100xf32, #tpu.memory_space<vmem>>, vector<32x4xf32>
    %72 = vector.extract_strided_slice %1 {offsets = [0, 62], sizes = [4, 320], strides = [1, 1]} : vector<4x420xf32> to vector<4x320xf32>
    %cst_39 = arith.constant dense<0.000000e+00> : vector<32x320xf32>
    %73 = tpu.matmul %71, %72, %cst_39 {dimension_numbers = #tpu.dot_dimension_numbers<[1], [0], [0], [1], [0, 0, 1, 1], [], []>} : vector<32x4xf32>, vector<4x320xf32>, vector<32x320xf32> -> vector<32x320xf32>
    %74 = arith.addf %70, %73 : vector<32x320xf32>
    %c0_40 = arith.constant 0 : index
    %c72 = arith.constant 72 : index
    %75 = vector.load %arg2[%c0_40, %c72] : memref<32x100xf32, #tpu.memory_space<vmem>>, vector<32x4xf32>
    %76 = vector.extract_strided_slice %1 {offsets = [0, 63], sizes = [4, 320], strides = [1, 1]} : vector<4x420xf32> to vector<4x320xf32>
    %cst_41 = arith.constant dense<0.000000e+00> : vector<32x320xf32>
    %77 = tpu.matmul %75, %76, %cst_41 {dimension_numbers = #tpu.dot_dimension_numbers<[1], [0], [0], [1], [0, 0, 1, 1], [], []>} : vector<32x4xf32>, vector<4x320xf32>, vector<32x320xf32> -> vector<32x320xf32>
    %78 = arith.addf %74, %77 : vector<32x320xf32>
    %c0_42 = arith.constant 0 : index
    %c76 = arith.constant 76 : index
    %79 = vector.load %arg2[%c0_42, %c76] : memref<32x100xf32, #tpu.memory_space<vmem>>, vector<32x4xf32>
    %80 = vector.extract_strided_slice %1 {offsets = [0, 64], sizes = [4, 320], strides = [1, 1]} : vector<4x420xf32> to vector<4x320xf32>
    %cst_43 = arith.constant dense<0.000000e+00> : vector<32x320xf32>
    %81 = tpu.matmul %79, %80, %cst_43 {dimension_numbers = #tpu.dot_dimension_numbers<[1], [0], [0], [1], [0, 0, 1, 1], [], []>} : vector<32x4xf32>, vector<4x320xf32>, vector<32x320xf32> -> vector<32x320xf32>
    %82 = arith.addf %78, %81 : vector<32x320xf32>
    %c0_44 = arith.constant 0 : index
    %c80 = arith.constant 80 : index
    %83 = vector.load %arg2[%c0_44, %c80] : memref<32x100xf32, #tpu.memory_space<vmem>>, vector<32x4xf32>
    %84 = vector.extract_strided_slice %1 {offsets = [0, 80], sizes = [4, 320], strides = [1, 1]} : vector<4x420xf32> to vector<4x320xf32>
    %cst_45 = arith.constant dense<0.000000e+00> : vector<32x320xf32>
    %85 = tpu.matmul %83, %84, %cst_45 {dimension_numbers = #tpu.dot_dimension_numbers<[1], [0], [0], [1], [0, 0, 1, 1], [], []>} : vector<32x4xf32>, vector<4x320xf32>, vector<32x320xf32> -> vector<32x320xf32>
    %86 = arith.addf %82, %85 : vector<32x320xf32>
    %c0_46 = arith.constant 0 : index
    %c84 = arith.constant 84 : index
    %87 = vector.load %arg2[%c0_46, %c84] : memref<32x100xf32, #tpu.memory_space<vmem>>, vector<32x4xf32>
    %88 = vector.extract_strided_slice %1 {offsets = [0, 81], sizes = [4, 320], strides = [1, 1]} : vector<4x420xf32> to vector<4x320xf32>
    %cst_47 = arith.constant dense<0.000000e+00> : vector<32x320xf32>
    %89 = tpu.matmul %87, %88, %cst_47 {dimension_numbers = #tpu.dot_dimension_numbers<[1], [0], [0], [1], [0, 0, 1, 1], [], []>} : vector<32x4xf32>, vector<4x320xf32>, vector<32x320xf32> -> vector<32x320xf32>
    %90 = arith.addf %86, %89 : vector<32x320xf32>
    %c0_48 = arith.constant 0 : index
    %c88 = arith.constant 88 : index
    %91 = vector.load %arg2[%c0_48, %c88] : memref<32x100xf32, #tpu.memory_space<vmem>>, vector<32x4xf32>
    %92 = vector.extract_strided_slice %1 {offsets = [0, 82], sizes = [4, 320], strides = [1, 1]} : vector<4x420xf32> to vector<4x320xf32>
    %cst_49 = arith.constant dense<0.000000e+00> : vector<32x320xf32>
    %93 = tpu.matmul %91, %92, %cst_49 {dimension_numbers = #tpu.dot_dimension_numbers<[1], [0], [0], [1], [0, 0, 1, 1], [], []>} : vector<32x4xf32>, vector<4x320xf32>, vector<32x320xf32> -> vector<32x320xf32>
    %94 = arith.addf %90, %93 : vector<32x320xf32>
    %c0_50 = arith.constant 0 : index
    %c92 = arith.constant 92 : index
    %95 = vector.load %arg2[%c0_50, %c92] : memref<32x100xf32, #tpu.memory_space<vmem>>, vector<32x4xf32>
    %96 = vector.extract_strided_slice %1 {offsets = [0, 83], sizes = [4, 320], strides = [1, 1]} : vector<4x420xf32> to vector<4x320xf32>
    %cst_51 = arith.constant dense<0.000000e+00> : vector<32x320xf32>
    %97 = tpu.matmul %95, %96, %cst_51 {dimension_numbers = #tpu.dot_dimension_numbers<[1], [0], [0], [1], [0, 0, 1, 1], [], []>} : vector<32x4xf32>, vector<4x320xf32>, vector<32x320xf32> -> vector<32x320xf32>
    %98 = arith.addf %94, %97 : vector<32x320xf32>
    %c0_52 = arith.constant 0 : index
    %c96 = arith.constant 96 : index
    %99 = vector.load %arg2[%c0_52, %c96] : memref<32x100xf32, #tpu.memory_space<vmem>>, vector<32x4xf32>
    %100 = vector.extract_strided_slice %1 {offsets = [0, 84], sizes = [4, 320], strides = [1, 1]} : vector<4x420xf32> to vector<4x320xf32>
    %cst_53 = arith.constant dense<0.000000e+00> : vector<32x320xf32>
    %101 = tpu.matmul %99, %100, %cst_53 {dimension_numbers = #tpu.dot_dimension_numbers<[1], [0], [0], [1], [0, 0, 1, 1], [], []>} : vector<32x4xf32>, vector<4x320xf32>, vector<32x320xf32> -> vector<32x320xf32>
    %102 = arith.addf %98, %101 : vector<32x320xf32>
    %c0_54 = arith.constant 0 : index
    %c0_55 = arith.constant 0 : index
    %103 = vector.load %arg3[%c0_54, %c0_55] : memref<32x1xf32, #tpu.memory_space<vmem>>, vector<32x1xf32>
    %104 = vector.broadcast %103 : vector<32x1xf32> to vector<32x320xf32>
    %105 = arith.addf %102, %104 : vector<32x320xf32>
    %c0_56 = arith.constant 0 : index
    %c0_57 = arith.constant 0 : index
    %c0_58 = arith.constant 0 : index
    %c0_59 = arith.constant 0 : index
    %106 = vector.load %arg5[%c0_56, %c0_57, %c0_58, %c0_59] : memref<1x1x32x320xf32, #tpu.memory_space<vmem>>, vector<1x1x32x320xf32>
    %107 = vector.shape_cast %106 : vector<1x1x32x320xf32> to vector<32x320xf32>
    %108 = vector.shape_cast %105 : vector<32x320xf32> to vector<1x1x32x320xf32>
    tpu.vector_store %arg5[%c0_56, %c0_57, %c0_58, %c0_59], %108 {strides = array<i32>} : memref<1x1x32x320xf32, #tpu.memory_space<vmem>>, vector<1x1x32x320xf32>,
    return
  }
  func.func @transform_0(%arg0: i32, %arg1: i32) -> (i32, i32) {
    %c0_i32 = arith.constant 0 : i32
    %c0_i32_0 = arith.constant 0 : i32
    %c0_i32_1 = arith.constant 0 : i32
    return %c0_i32, %c0_i32_0 : i32, i32
  }
  func.func @transform_1(%arg0: i32, %arg1: i32) -> (i32, i32) {
    %c0_i32 = arith.constant 0 : i32
    %c0_i32_0 = arith.constant 0 : i32
    %c0_i32_1 = arith.constant 0 : i32
    return %c0_i32, %c0_i32_0 : i32, i32
  }
  func.func @transform_2(%arg0: i32, %arg1: i32) -> (i32, i32, i32, i32) {
    %c0_i32 = arith.constant 0 : i32
    %c0_i32_0 = arith.constant 0 : i32
    %c0_i32_1 = arith.constant 0 : i32
    return %arg0, %arg1, %c0_i32, %c0_i32_0 : i32, i32, i32, i32
  }
  func.func @transform_3(%arg0: i32, %arg1: i32) -> (i32, i32, i32, i32) {
    %c0_i32 = arith.constant 0 : i32
    %c0_i32_0 = arith.constant 0 : i32
    %c0_i32_1 = arith.constant 0 : i32
    return %arg0, %arg1, %c0_i32, %c0_i32_0 : i32, i32, i32, i32
  }
}

</mosaic_0001>

<bundles_post_ra>
// kernel: tile.8
= control target key start
LH: loop header
LB: loop body
LE: loop exit
PB: predicated region body
PF: predicated region fallthrough
CT: control target
= control target key end

     0   :  { %s22_s0 = inlined_call_operand.vmem [shape: f32[8], index: 0, kind: input, shape index: {}]   ;;  %s23_s1 = inlined_call_operand.vmem [shape: f32[4,8], index: 1, kind: output, shape index: {}]  }
   0x1   :  { %v4_v0 = vld [vmem:[%s22_s0] ss:$0 sm:$0xff] }
   0x2   :  { %5 = vst [vmem:[%s23_s1] sm:$0xf] %v4_v0 }

// kernel: tile.0
= control target key start
LH: loop header
LB: loop body
LE: loop exit
PB: predicated region body
PF: predicated region fallthrough
CT: control target
= control target key end

     0   :  { %s66_s8 = smov 125   ;;  %vm7_vm0 = vcmask 7168   ;;  %s67_s11 = smov 126   ;;  %s117_s0 = inlined_call_operand.vmem [shape: f32[4,8], index: 0, kind: input, shape index: {}]   ;;  %s118_s1 = inlined_call_operand.vmem [shape: f32[32,1], index: 1, kind: output, shape index: {}]  }
   0x1   :  { %v4_v0 = vld [vmem:[%s117_s0] sm:$0xf]  ;;  %s65_s0 = smov 127   ;;  %s68_s12 = smov 124  }
   0x2   :  { %5 = vst [vmem:[#allocation0] sm:$0xf] %v4_v0  ;;  %s69_s13 = smov 123   ;;  %s70_s14 = smov 122  }
   0x3   :  { %s71_s15 = smov 121  }
   0x9   :  { %v9_v1 = vld [vmem:[#allocation0] sm:$0xf]  }
   0xa   :  { %v21_v2 = vld [vmem:[#allocation0] sm:$0xf]   ;;  %10 = vrot.lane.b32.xlu0 %v9_v1, %s65_s0 }
   0xb   :  { %22 = vrot.lane.b32.xlu1 %v21_v2, %s66_s8  ;;  %v15_v3 = vld [vmem:[#allocation0] sm:$0xf]  }
   0xc   :  { %v27_v4 = vld [vmem:[#allocation0] sm:$0xf]  }
   0xd   :  { %v6_v5 = vld [vmem:[#allocation0] sm:$0xf]  }
   0xe   :  { %8 = vst.msk [vmem:[%s118_s1] ss:$8 sm:$0xf] %vm7_vm0, %v6_v5   ;;  %16 = vrot.lane.b32.xlu0 %v15_v3, %s67_s11  ;;  %v33_v6 = vld [vmem:[#allocation0] sm:$0xf]  }
   0xf   :  { %28 = vrot.lane.b32.xlu1 %v27_v4, %s68_s12  ;;  %v39_v7 = vld [vmem:[#allocation0] sm:$0xf]  }
  0x10   :  { %v45_v8 = vld [vmem:[#allocation0] sm:$0xf]  }
  0x12   :  { %34 = vrot.lane.b32.xlu0 %v33_v6, %s69_s13 }
  0x13   :  { %40 = vrot.lane.b32.xlu1 %v39_v7, %s70_s14 }
  0x16   :  { %46 = vrot.lane.b32.xlu0 %v45_v8, %s71_s15 }
  0x7c   :  { %v11_v9 = vpop.permute.xlu0 %10  }
  0x7d   :  { %v23_v10 = vpop.permute.xlu1 %22   ;;  %51 = vst.msk [vmem:[%s118_s1 + $0x1] ss:$8 sm:$0xf] %vm7_vm0, %v11_v9  }
  0x7e   :  { %53 = vst.msk [vmem:[%s118_s1 + $0x3] ss:$8 sm:$0xf] %vm7_vm0, %v23_v10  }
  0x80   :  { %v17_v11 = vpop.permute.xlu0 %16  }
  0x81   :  { %v29_v12 = vpop.permute.xlu1 %28   ;;  %52 = vst.msk [vmem:[%s118_s1 + $0x2] ss:$8 sm:$0xf] %vm7_vm0, %v17_v11  }
  0x82   :  { %54 = vst.msk [vmem:[%s118_s1 + $0x4] ss:$8 sm:$0xf] %vm7_vm0, %v29_v12  }
  0x84   :  { %v35_v13 = vpop.permute.xlu0 %34  }
  0x85   :  { %v41_v14 = vpop.permute.xlu1 %40   ;;  %55 = vst.msk [vmem:[%s118_s1 + $0x5] ss:$8 sm:$0xf] %vm7_vm0, %v35_v13  }
  0x86   :  { %56 = vst.msk [vmem:[%s118_s1 + $0x6] ss:$8 sm:$0xf] %vm7_vm0, %v41_v14  }
  0x88   :  { %v47_v15 = vpop.permute.xlu0 %46  }
  0x89   :  { %57 = vst.msk [vmem:[%s118_s1 + $0x7] ss:$8 sm:$0xf] %vm7_vm0, %v47_v15  }

// kernel: re_conv_823_forward.1
= control target key start
LH: loop header
LB: loop body
LE: loop exit
PB: predicated region body
PF: predicated region fallthrough
CT: control target
= control target key end

     0   :  { %s7004_s12 = smov 0   ;;  %s7006_s13 = smov 0   ;;  %s8173_s0 = inlined_call_operand.vmem [shape: f32[32,100], index: 0, kind: input, shape index: {}]   ;;  %s8174_s1 = inlined_call_operand.vmem [shape: f32[32,1], index: 1, kind: input, shape index: {}]   ;;  %s8175_s2 = inlined_call_operand.vmem [shape: f32[2,1,4,420], index: 2, kind: input, shape index: {}]   ;;  %s8176_s3 = inlined_call_operand.vmem [shape: f32[2,1,32,320], index: 3, kind: output, shape index: {}]  }
   0x1   :  { %s7008_s14 = smov 0  }
   0x2 LB: > { %s25_s15 = sadd.s32 1, %s6937_s13  ;;  %p5950_p0 = scmp.ge.s32.totalorder %s6941_s14, 1  ;;  %s6941_s14 = sphi %s7008_s14, %s13_s14   ;;  %s6937_s13 = sphi %s7006_s13, %s8178_s13   ;;  %s6933_s12 = sphi %s7004_s12, %s8177_s12  }
   0x3   : > { %p27_p1 = scmp.ge.s32.totalorder %s25_s15, 2  ;;  %p157_p2 = scmp.lt.s32.totalorder %s6941_s14, 3 }
   0x5   : > { %s8180_s15 = smov (%p27_p1, %s25_s15), 0  ;;  %p158_p3 = pnand %p5950_p0, %p157_p2 }
   0x6   : > { %p189_p4 = scmp.lt.s32.totalorder (!%p158_p3), %s6933_s12, 1  ;;  %v6943_v2 = vmov (!%p158_p3), 0.0   ;;  %s6944_s20 = smov (!%p158_p3), 107   ;;  %v7051_v4 = vld [vmem:[%s8173_s0] sm:$0xff] (!%p158_p3)  ;;  %v7060_v5 = vld [vmem:[%s8173_s0 + $0x8] sm:$0xff] (!%p158_p3)  ;;  %v7069_v6 = vld [vmem:[%s8173_s0 + $0x10] sm:$0xff] (!%p158_p3) }
   0x7   : > { %161 = sbr.rel (%p158_p3) target bundleno = 708 (0x2c4), region = 32  ;;  %317 = vmatprep.mubr.f32.mxu1 (!%p158_p3), %v6943_v2  ;;  %1618 = vmatprep.mubr.f32.mxu0 (!%p158_p3), %v6943_v2  ;;  %s6945_s21 = smov (!%p158_p3), 127   ;;  %v7082_v7 = vld [vmem:[%s8173_s0 + $0x18] sm:$0xff] (!%p158_p3)  ;;  %vm234_vm0 = vcmask (!%p158_p3), 1039360   ;;  %vm1537_vm1 = vcmask (!%p158_p3), 875520   ;;  %vm246_vm2 = vcmask (!%p158_p3), 1043456  }
   0x8   : > { %s6946_s24 = smov (!%p158_p3), 124   ;;  %s6947_s25 = smov (!%p158_p3), 104   ;;  %vm237_vm3 = vcmask (!%p158_p3), 31744   ;;  %vm1762_vm4 = vcmask (!%p158_p3), 867328   ;;  %vm1987_vm5 = vcmask (!%p158_p3), 859136   ;;  %vm2212_vm6 = vcmask (!%p158_p3), 850944  }
   0x9   : > { %s6948_s30 = smov (!%p158_p3), 106   ;;  %s6949_s4 = smov (!%p158_p3), 100   ;;  %vm637_vm7 = vcmask (!%p158_p3), 1031168   ;;  %vm2437_vm8 = vcmask (!%p158_p3), 719872   ;;  %vm862_vm9 = vcmask (!%p158_p3), 1022976   ;;  %vm2662_vm10 = vcmask (!%p158_p3), 711680  }
   0xa   : > { %s6950_s7 = smov (!%p158_p3), 105   ;;  %s6951_s8 = smov (!%p158_p3), 96   ;;  %vm2887_vm11 = vcmask (!%p158_p3), 703488   ;;  %vm1087_vm12 = vcmask (!%p158_p3), 1014784   ;;  %vm3112_vm13 = vcmask (!%p158_p3), 695296   ;;  %vm1312_vm14 = vcmask (!%p158_p3), 883712  }
   0xb   : > { %s6952_s9 = smov (!%p158_p3), 126   ;;  %s6953_s10 = smov (!%p158_p3), 92   ;;  %vm3337_vm15 = vcmask (!%p158_p3), 687104  }
   0xc   : > { %s6954_s11 = smov (!%p158_p3), 120   ;;  %s6956_s17 = smov (!%p158_p3), 125  }
   0xd   : > { %s6957_s18 = smov (!%p158_p3), 87   ;;  %s6960_s22 = smov (!%p158_p3), 86  }
   0xe   : > { %s8182_s12 = smov (!%p189_p4, %s6933_s12), 1  ;;  %s6961_s23 = smov 80  }
   0xf   : > { %s6231_s16 = sshll.u32 %s8182_s12, 4  ;;  %s6962_s26 = smov 112  }
  0x10   : > { %s7028_s19 = scalar_lea.vmem %s8175_s2, %s6231_s16  ;;  %s6955_s16 = smov 88  }
  0x11   : > { %v7031_v0 = vld [vmem:[%s7028_s19 + $0x8] sm:$0xff]  ;;  %v7034_v1 = vld [vmem:[%s7028_s19] sm:$0xff]  ;;  %s6964_s27 = smov 76   ;;  %s6965_s28 = smov 108  }
  0x12   : > { %1535 = vrot.lane.b32.xlu0 %v7031_v0, %s6944_s20  ;;  %1531 = vrot.lane.b32.xlu1 %v7034_v1, %s6944_s20  ;;  %v7044_v3 = vcombine.high %v7034_v1, %v7034_v1  ;;  %s6966_s29 = smov 72   ;;  %s6970_s5 = smov 66  }
  0x13   : > { %s6971_s6 = smov 60  }
  0x16   : > { %232 = vrot.lane.b32.xlu0 %v7031_v0, %s6945_s21  ;;  %228 = vrot.lane.b32.xlu1 %v7034_v1, %s6945_s21 }
  0x1a   : > { %230 = vrot.lane.b32.xlu1 %v7044_v3, %s6945_s21  ;;  %1533 = vrot.lane.b32.xlu0 %v7044_v3, %s6944_s20  ;;  %s6958_s20 = smov 116   ;;  %s6959_s21 = smov 84  }
  0x1e   : > { %217 = vrot.lane.b32.xlu1 %v7051_v4, %s6946_s24  ;;  %1523 = vrot.lane.b32.xlu0 %v7051_v4, %s6947_s25 }
  0x22   : > { %219 = vrot.lane.b32.xlu1 %v7060_v5, %s6946_s24  ;;  %1525 = vrot.lane.b32.xlu0 %v7060_v5, %s6947_s25 }
  0x26   : > { %1758 = vrot.lane.b32.xlu1 %v7044_v3, %s6948_s30  ;;  %1527 = vrot.lane.b32.xlu0 %v7069_v6, %s6947_s25 }
  0x2a   : > { %221 = vrot.lane.b32.xlu1 %v7069_v6, %s6946_s24  ;;  %1760 = vrot.lane.b32.xlu0 %v7031_v0, %s6948_s30 }
  0x2e   : > { %1748 = vrot.lane.b32.xlu1 %v7051_v4, %s6949_s4  ;;  %1756 = vrot.lane.b32.xlu0 %v7034_v1, %s6948_s30  ;;  %s6967_s30 = smov 68  }
  0x32   : > { %1750 = vrot.lane.b32.xlu1 %v7060_v5, %s6949_s4  ;;  %223 = vrot.lane.b32.xlu0 %v7082_v7, %s6946_s24 }
  0x36   : > { %1754 = vrot.lane.b32.xlu1 %v7082_v7, %s6949_s4  ;;  %1752 = vrot.lane.b32.xlu0 %v7069_v6, %s6949_s4  ;;  %s6968_s4 = smov 67  }
  0x3a   : > { %1985 = vrot.lane.b32.xlu1 %v7031_v0, %s6950_s7  ;;  %1983 = vrot.lane.b32.xlu0 %v7044_v3, %s6950_s7 }
  0x3e   : > { %1973 = vrot.lane.b32.xlu1 %v7051_v4, %s6951_s8  ;;  %1981 = vrot.lane.b32.xlu0 %v7034_v1, %s6950_s7  ;;  %s6972_s7 = smov 65  }
  0x42   : > { %1977 = vrot.lane.b32.xlu1 %v7069_v6, %s6951_s8  ;;  %1975 = vrot.lane.b32.xlu0 %v7060_v5, %s6951_s8 }
  0x46   : > { %2208 = vrot.lane.b32.xlu1 %v7044_v3, %s6947_s25  ;;  %1979 = vrot.lane.b32.xlu0 %v7082_v7, %s6951_s8  ;;  %s6973_s8 = smov 56  }
  0x4a   : > { %2206 = vrot.lane.b32.xlu1 %v7034_v1, %s6947_s25  ;;  %2210 = vrot.lane.b32.xlu0 %v7031_v0, %s6947_s25 }
  0x4e   : > { %633 = vrot.lane.b32.xlu1 %v7044_v3, %s6952_s9  ;;  %2198 = vrot.lane.b32.xlu0 %v7051_v4, %s6953_s10 }
  0x52   : > { %631 = vrot.lane.b32.xlu1 %v7034_v1, %s6952_s9  ;;  %635 = vrot.lane.b32.xlu0 %v7031_v0, %s6952_s9  ;;  %s6974_s9 = smov 52  }
  0x56   : > { %623 = vrot.lane.b32.xlu1 %v7051_v4, %s6954_s11  ;;  %2200 = vrot.lane.b32.xlu0 %v7060_v5, %s6953_s10 }
  0x5a   : > { %625 = vrot.lane.b32.xlu1 %v7060_v5, %s6954_s11  ;;  %2202 = vrot.lane.b32.xlu0 %v7069_v6, %s6953_s10 }
  0x5e   : > { %2433 = vrot.lane.b32.xlu1 %v7044_v3, %s6955_s16  ;;  %2204 = vrot.lane.b32.xlu0 %v7082_v7, %s6953_s10  ;;  %s6975_s10 = smov 48  }
  0x62   : > { %627 = vrot.lane.b32.xlu1 %v7069_v6, %s6954_s11  ;;  %2435 = vrot.lane.b32.xlu0 %v7031_v0, %s6955_s16 }
  0x66   : > { %2423 = vrot.lane.b32.xlu1 %v7051_v4, %s6955_s16  ;;  %2431 = vrot.lane.b32.xlu0 %v7034_v1, %s6955_s16 }
  0x6a   : > { %2425 = vrot.lane.b32.xlu1 %v7060_v5, %s6955_s16  ;;  %629 = vrot.lane.b32.xlu0 %v7082_v7, %s6954_s11  ;;  %s6976_s11 = smov 47  }
  0x6e   : > { %858 = vrot.lane.b32.xlu1 %v7044_v3, %s6956_s17  ;;  %2427 = vrot.lane.b32.xlu0 %v7069_v6, %s6955_s16 }
  0x72   : > { %856 = vrot.lane.b32.xlu1 %v7034_v1, %s6956_s17  ;;  %860 = vrot.lane.b32.xlu0 %v7031_v0, %s6956_s17 }
  0x76   : > { %2658 = vrot.lane.b32.xlu1 %v7044_v3, %s6957_s18  ;;  %2429 = vrot.lane.b32.xlu0 %v7082_v7, %s6955_s16 }
  0x7a   : > { %848 = vrot.lane.b32.xlu1 %v7051_v4, %s6958_s20  ;;  %2660 = vrot.lane.b32.xlu0 %v7031_v0, %s6957_s18 }
  0x7e   : > { %2648 = vrot.lane.b32.xlu1 %v7051_v4, %s6959_s21  ;;  %2656 = vrot.lane.b32.xlu0 %v7034_v1, %s6957_s18  ;;  %s6977_s18 = smov 44  }
  0x82   : > { %2650 = vrot.lane.b32.xlu1 %v7060_v5, %s6959_s21  ;;  %850 = vrot.lane.b32.xlu0 %v7060_v5, %s6958_s20 }
  0x84   : > { %v7132_v8 = vpop.permute.xlu0 %1535  ;;  %v1532_v9 = vpop.permute.xlu1 %1531 }
  0x86   : > { %2652 = vrot.lane.b32.xlu1 %v7069_v6, %s6959_s21  ;;  %852 = vrot.lane.b32.xlu0 %v7069_v6, %s6958_s20 }
  0x88   : > { %v233_v10 = vpop.permute.xlu0 %232  ;;  %v229_v11 = vpop.permute.xlu1 %228 }
  0x8a   : > { %2654 = vrot.lane.b32.xlu1 %v7082_v7, %s6959_s21  ;;  %854 = vrot.lane.b32.xlu0 %v7082_v7, %s6958_s20 }
  0x8c   : > { %v231_v12 = vpop.permute.xlu1 %230  ;;  %v1534_v13 = vpop.permute.xlu0 %1533 }
  0x8d   : > { %v236_v14 = vsel %vm234_vm0, %v231_v12, %v233_v10  ;;  %v7141_v15 = vsel %vm1537_vm1, %v1534_v13, %v7132_v8  ;;  %v235_v16 = vsel %vm234_vm0, %v229_v11, %v231_v12  ;;  %v7143_v17 = vsel %vm1537_vm1, %v1532_v9, %v1534_v13 }
  0x8e   : > { %2885 = vrot.lane.b32.xlu1 %v7031_v0, %s6960_s22  ;;  %5954 = vmatprep.subr.msk.mxu1 %vm246_vm2, %v236_v14  ;;  %vm3562_vm0 = vcmask 556032   ;;  %vm3787_vm1 = vcmask 547840  }
  0x8f   : > { %2883 = vrot.lane.b32.xlu0 %v7044_v3, %s6960_s22  ;;  %6020 = vmatprep.subr.msk.mxu0 %vm246_vm2, %v7141_v15 }
  0x90   : > { %5955 = vmatpush1.msk.msra.mxu1 %vm246_vm2, %v235_v16  ;;  %6021 = vmatpush1.msk.msra.mxu0 %vm246_vm2, %v7143_v17  ;;  %v218_v18 = vpop.permute.xlu1 %217  ;;  %v7153_v19 = vpop.permute.xlu0 %1523 }
  0x91   : > { %6357 = vmatprep.subr.msk.mxu1 %vm246_vm2, %v233_v10  ;;  %5956 = vmatmul.mubr.msk.f32.vlgmr.msra.gmra.mrb[0].mxu1 %vm237_vm3, %v218_v18 }
  0x92   : > { %6358 = vmatpush3.msk.msra.mxu1 %vm246_vm2, %v233_v10  ;;  %6022 = vmatmul.mubr.msk.f32.vlgmr.msra.gmra.mrb[0].mxu0 %vm237_vm3, %v7153_v19 }
  0x93   : > { %2873 = vrot.lane.b32.xlu1 %v7051_v4, %s6961_s23  ;;  %2881 = vrot.lane.b32.xlu0 %v7034_v1, %s6960_s22 }
  0x94   : > { %v220_v20 = vpop.permute.xlu1 %219  ;;  %1624 = vmatprep.mubr.f32.mxu0 %v6943_v2  ;;  %v7164_v21 = vpop.permute.xlu0 %1525  ;;  %323 = vmatprep.mubr.f32.mxu1 %v6943_v2 }
  0x95   : > { %5957 = vmatmul.mubr.msk.f32.gmra.mrb[2].mxu1 %vm237_vm3, %v220_v20  ;;  %5965 = vmatprep.subr.msk.mxu1 %vm246_vm2, %v7044_v3 }
  0x96   : > { %6023 = vmatmul.mubr.msk.f32.gmra.mrb[2].mxu0 %vm237_vm3, %v7164_v21  ;;  %329 = vmatprep.mubr.f32.mxu1 %v6943_v2 }
  0x97   : > { %1085 = vrot.lane.b32.xlu1 %v7031_v0, %s6946_s24  ;;  %1083 = vrot.lane.b32.xlu0 %v7044_v3, %s6946_s24 }
  0x98   : > { %v1759_v22 = vpop.permute.xlu1 %1758  ;;  %1630 = vmatprep.mubr.f32.mxu0 %v6943_v2  ;;  %v7178_v23 = vpop.permute.xlu0 %1527 }
  0x9a   : > { %6024 = vmatmul.mubr.msk.f32.gmra.mrb[4].mxu0 %vm237_vm3, %v7178_v23 }
  0x9b   : > { %2875 = vrot.lane.b32.xlu1 %v7060_v5, %s6961_s23  ;;  %1081 = vrot.lane.b32.xlu0 %v7034_v1, %s6946_s24  ;;  %s6963_s24 = smov 85  }
  0x9c   : > { %v222_v24 = vpop.permute.xlu1 %221  ;;  %v7186_v25 = vpop.permute.xlu0 %1760  ;;  %1843 = vmatprep.mubr.f32.mxu0 %v6943_v2 }
  0x9d   : > { %5958 = vmatmul.mubr.msk.f32.gmra.mrb[4].mxu1 %vm237_vm3, %v222_v24  ;;  %v1764_v26 = vsel %vm1762_vm4, %v1759_v22, %v7186_v25 }
  0x9e   : > { %6031 = vmatprep.subr.msk.mxu0 %vm246_vm2, %v1764_v26  ;;  %335 = vmatprep.mubr.f32.mxu1 %v6943_v2 }
  0x9f   : > { %2877 = vrot.lane.b32.xlu1 %v7069_v6, %s6961_s23  ;;  %1073 = vrot.lane.b32.xlu0 %v7051_v4, %s6962_s26 }
  0xa0   : > { %v7197_v27 = vpop.permute.xlu1 %1748  ;;  %v1757_v28 = vpop.permute.xlu0 %1756 }
  0xa1   : > { %v1763_v29 = vsel %vm1762_vm4, %v1757_v28, %v1759_v22  ;;  %vm4012_vm4 = vcmask 539648  }
  0xa2   : > { %6032 = vmatpush1.msk.msra.mxu0 %vm246_vm2, %v1763_v29 }
  0xa3   : > { %2879 = vrot.lane.b32.xlu1 %v7082_v7, %s6961_s23  ;;  %1075 = vrot.lane.b32.xlu0 %v7060_v5, %s6962_s26 }
  0xa4   : > { %6033 = vmatmul.mubr.msk.f32.vlgmr.msra.gmra.mrb[0].mxu0 %vm237_vm3, %v7197_v27  ;;  %v7206_v30 = vpop.permute.xlu1 %1750  ;;  %v224_v31 = vpop.permute.xlu0 %223 }
  0xa5   : > { %5959 = vmatmul.mubr.msk.f32.gmra.mrb[6].mxu1 %vm237_vm3, %v224_v31  ;;  %1849 = vmatprep.mubr.f32.mxu0 %v6943_v2 }
  0xa6   : > { %6359 = vmatprep.mubr.msk.f32.mxu1 %vm237_vm3, %v218_v18 }
  0xa7   : > { %3110 = vrot.lane.b32.xlu1 %v7031_v0, %s6963_s24  ;;  %3108 = vrot.lane.b32.xlu0 %v7044_v3, %s6963_s24 }
  0xa8   : > { %6034 = vmatmul.mubr.msk.f32.gmra.mrb[2].mxu0 %vm237_vm3, %v7206_v30  ;;  %v7215_v32 = vpop.permute.xlu1 %1754  ;;  %v7217_v33 = vpop.permute.xlu0 %1752 }
  0xa9   : > { %6360 = vmatmul.mubr.msk.f32.vlgmr.msra.gmra.mrb[8].mxu1 %vm237_vm3, %v220_v20  ;;  %1855 = vmatprep.mubr.f32.mxu0 %v6943_v2 }
  0xaa   : > { %6362 = vmatprep.mubr.msk.f32.mxu1 %vm237_vm3, %v222_v24  ;;  %5966 = vmatpush1.msk.msra.mxu1 %vm246_vm2, %v7034_v1 }
  0xab   : > { %3106 = vrot.lane.b32.xlu1 %v7034_v1, %s6963_s24  ;;  %1077 = vrot.lane.b32.xlu0 %v7069_v6, %s6962_s26 }
  0xac   : > { %6035 = vmatmul.mubr.msk.f32.gmra.mrb[4].mxu0 %vm237_vm3, %v7217_v33  ;;  %v7229_v34 = vpop.permute.xlu1 %1985  ;;  %v1984_v35 = vpop.permute.xlu0 %1983  ;;  %6365 = vmatprep.subr.msk.mxu1 %vm246_vm2, %v7031_v0 }
  0xad   : > { %6363 = vmatmul.mubr.msk.f32.gmra.mrb[10].mxu1 %vm237_vm3, %v224_v31  ;;  %1861 = vmatprep.mubr.f32.mxu0 %v6943_v2  ;;  %v1989_v36 = vsel %vm1987_vm5, %v1984_v35, %v7229_v34 }
  0xae   : > { %6042 = vmatprep.subr.msk.mxu0 %vm246_vm2, %v1989_v36  ;;  %505 = vmatprep.mubr.f32.mxu1 %v6943_v2 }
  0xaf   : > { %1079 = vrot.lane.b32.xlu1 %v7082_v7, %s6962_s26  ;;  %3098 = vrot.lane.b32.xlu0 %v7051_v4, %s6964_s27 }
  0xb0   : > { %6036 = vmatmul.mubr.msk.f32.gmra.mrb[6].mxu0 %vm237_vm3, %v7215_v32  ;;  %v7244_v37 = vpop.permute.xlu1 %1973  ;;  %v1982_v38 = vpop.permute.xlu0 %1981 }
  0xb1   : > { %v1988_v39 = vsel %vm1987_vm5, %v1982_v38, %v1984_v35  ;;  %5967 = vmatmul.mubr.msk.f32.vlgmr.msra.gmra.mrb[0].mxu1 %vm237_vm3, %v7051_v4  ;;  %2068 = vmatprep.mubr.f32.mxu0 %v6943_v2  ;;  %vm4237_vm5 = vcmask 531456  }
  0xb2   : > { %6043 = vmatpush1.msk.msra.mxu0 %vm246_vm2, %v1988_v39  ;;  %511 = vmatprep.mubr.f32.mxu1 %v6943_v2 }
  0xb3   : > { %3102 = vrot.lane.b32.xlu1 %v7069_v6, %s6964_s27  ;;  %3100 = vrot.lane.b32.xlu0 %v7060_v5, %s6964_s27 }
  0xb4   : > { %6044 = vmatmul.mubr.msk.f32.vlgmr.msra.gmra.mrb[0].mxu0 %vm237_vm3, %v7244_v37  ;;  %v7256_v40 = vpop.permute.xlu1 %1977  ;;  %v7258_v41 = vpop.permute.xlu0 %1975  ;;  %6366 = vmatpush3.msk.msra.mxu1 %vm246_vm2, %v7031_v0 }
  0xb5   : > { %5968 = vmatmul.mubr.msk.f32.gmra.mrb[2].mxu1 %vm237_vm3, %v7060_v5  ;;  %2074 = vmatprep.mubr.f32.mxu0 %v6943_v2 }
  0xb6   : > { %517 = vmatprep.mubr.f32.mxu1 %v6943_v2 }
  0xb7   : > { %1310 = vrot.lane.b32.xlu1 %v7031_v0, %s6965_s28  ;;  %1308 = vrot.lane.b32.xlu0 %v7044_v3, %s6965_s28 }
  0xb8   : > { %6045 = vmatmul.mubr.msk.f32.gmra.mrb[2].mxu0 %vm237_vm3, %v7258_v41  ;;  %v2209_v42 = vpop.permute.xlu1 %2208  ;;  %v7272_v43 = vpop.permute.xlu0 %1979 }
  0xb9   : > { %5969 = vmatmul.mubr.msk.f32.gmra.mrb[4].mxu1 %vm237_vm3, %v7069_v6  ;;  %2080 = vmatprep.mubr.f32.mxu0 %v6943_v2 }
  0xba   : > { %523 = vmatprep.mubr.f32.mxu1 %v6943_v2 }
  0xbb   : > { %3104 = vrot.lane.b32.xlu1 %v7082_v7, %s6964_s27  ;;  %1306 = vrot.lane.b32.xlu0 %v7034_v1, %s6965_s28  ;;  %s6978_s27 = smov 46  }
  0xbc   : > { %6046 = vmatmul.mubr.msk.f32.gmra.mrb[4].mxu0 %vm237_vm3, %v7256_v40  ;;  %v2207_v44 = vpop.permute.xlu1 %2206  ;;  %v7283_v45 = vpop.permute.xlu0 %2210 }
  0xbd   : > { %5970 = vmatmul.mubr.msk.f32.gmra.mrb[6].mxu1 %vm237_vm3, %v7082_v7  ;;  %2086 = vmatprep.mubr.f32.mxu0 %v6943_v2  ;;  %v2214_v46 = vsel %vm2212_vm6, %v2209_v42, %v7283_v45  ;;  %v2213_v47 = vsel %vm2212_vm6, %v2207_v44, %v2209_v42  ;;  %vm4462_vm6 = vcmask 523264  }
  0xbe   : > { %6053 = vmatprep.subr.msk.mxu0 %vm246_vm2, %v2214_v46  ;;  %6367 = vmatprep.mubr.msk.f32.mxu1 %vm237_vm3, %v7051_v4 }
  0xbf   : > { %3335 = vrot.lane.b32.xlu1 %v7031_v0, %s6959_s21  ;;  %3333 = vrot.lane.b32.xlu0 %v7044_v3, %s6959_s21 }
  0xc0   : > { %6047 = vmatmul.mubr.msk.f32.gmra.mrb[6].mxu0 %vm237_vm3, %v7272_v43  ;;  %v634_v48 = vpop.permute.xlu1 %633  ;;  %v7298_v49 = vpop.permute.xlu0 %2198 }
  0xc1   : > { %6054 = vmatpush1.msk.msra.mxu0 %vm246_vm2, %v2213_v47  ;;  %6368 = vmatmul.mubr.msk.f32.vlgmr.msra.gmra.mrb[8].mxu1 %vm237_vm3, %v7060_v5 }
  0xc2   : > { %2293 = vmatprep.mubr.f32.mxu0 %v6943_v2  ;;  %6370 = vmatprep.mubr.msk.f32.mxu1 %vm237_vm3, %v7069_v6 }
  0xc3   : > { %3331 = vrot.lane.b32.xlu1 %v7034_v1, %s6959_s21  ;;  %1298 = vrot.lane.b32.xlu0 %v7051_v4, %s6965_s28 }
  0xc4   : > { %6055 = vmatmul.mubr.msk.f32.vlgmr.msra.gmra.mrb[0].mxu0 %vm237_vm3, %v7298_v49  ;;  %v632_v50 = vpop.permute.xlu1 %631  ;;  %v636_v51 = vpop.permute.xlu0 %635 }
  0xc5   : > { %v638_v52 = vsel %vm637_vm7, %v632_v50, %v634_v48  ;;  %6371 = vmatmul.mubr.msk.f32.gmra.mrb[10].mxu1 %vm237_vm3, %v7082_v7  ;;  %v639_v53 = vsel %vm637_vm7, %v634_v48, %v636_v51  ;;  %2299 = vmatprep.mubr.f32.mxu0 %v6943_v2  ;;  %vm4690_vm7 = vcmask 392192  }
  0xc6   : > { %5976 = vmatprep.subr.msk.mxu1 %vm246_vm2, %v639_v53  ;;  %718 = vmatprep.mubr.f32.mxu1 %v6943_v2 }
  0xc7   : > { %1300 = vrot.lane.b32.xlu1 %v7060_v5, %s6965_s28  ;;  %3323 = vrot.lane.b32.xlu0 %v7051_v4, %s6966_s29 }
  0xc8   : > { %5977 = vmatpush1.msk.msra.mxu1 %vm246_vm2, %v638_v52  ;;  %v624_v54 = vpop.permute.xlu1 %623  ;;  %v7321_v55 = vpop.permute.xlu0 %2200 }
  0xc9   : > { %6373 = vmatprep.subr.msk.mxu1 %vm246_vm2, %v636_v51  ;;  %5978 = vmatmul.mubr.msk.f32.vlgmr.msra.gmra.mrb[0].mxu1 %vm237_vm3, %v624_v54 }
  0xca   : > { %6374 = vmatpush3.msk.msra.mxu1 %vm246_vm2, %v636_v51  ;;  %6056 = vmatmul.mubr.msk.f32.gmra.mrb[2].mxu0 %vm237_vm3, %v7321_v55 }
  0xcb   : > { %1302 = vrot.lane.b32.xlu1 %v7069_v6, %s6965_s28  ;;  %3325 = vrot.lane.b32.xlu0 %v7060_v5, %s6966_s29 }
  0xcc   : > { %v626_v56 = vpop.permute.xlu1 %625  ;;  %2305 = vmatprep.mubr.f32.mxu0 %v6943_v2  ;;  %v7332_v57 = vpop.permute.xlu0 %2202  ;;  %724 = vmatprep.mubr.f32.mxu1 %v6943_v2 }
  0xcd   : > { %5979 = vmatmul.mubr.msk.f32.gmra.mrb[2].mxu1 %vm237_vm3, %v626_v56 }
  0xce   : > { %6057 = vmatmul.mubr.msk.f32.gmra.mrb[4].mxu0 %vm237_vm3, %v7332_v57  ;;  %730 = vmatprep.mubr.f32.mxu1 %v6943_v2 }
  0xcf   : > { %1304 = vrot.lane.b32.xlu1 %v7082_v7, %s6965_s28  ;;  %3327 = vrot.lane.b32.xlu0 %v7069_v6, %s6966_s29  ;;  %s6979_s28 = smov 40  }
  0xd0   : > { %v2434_v58 = vpop.permute.xlu1 %2433  ;;  %2311 = vmatprep.mubr.f32.mxu0 %v6943_v2  ;;  %v7343_v59 = vpop.permute.xlu0 %2204 }
  0xd2   : > { %6058 = vmatmul.mubr.msk.f32.gmra.mrb[6].mxu0 %vm237_vm3, %v7343_v59 }
  0xd3   : > { %3558 = vrot.lane.b32.xlu1 %v7044_v3, %s6967_s30  ;;  %3329 = vrot.lane.b32.xlu0 %v7082_v7, %s6966_s29  ;;  %s6980_s29 = smov 45  }
  0xd4   : > { %v628_v60 = vpop.permute.xlu1 %627  ;;  %v7350_v61 = vpop.permute.xlu0 %2435  ;;  %2518 = vmatprep.mubr.f32.mxu0 %v6943_v2 }
  0xd5   : > { %5980 = vmatmul.mubr.msk.f32.gmra.mrb[4].mxu1 %vm237_vm3, %v628_v60  ;;  %v2439_v62 = vsel %vm2437_vm8, %v2434_v58, %v7350_v61 }
  0xd6   : > { %6064 = vmatprep.subr.msk.mxu0 %vm246_vm2, %v2439_v62  ;;  %736 = vmatprep.mubr.f32.mxu1 %v6943_v2 }
  0xd7   : > { %3556 = vrot.lane.b32.xlu1 %v7034_v1, %s6967_s30  ;;  %3560 = vrot.lane.b32.xlu0 %v7031_v0, %s6967_s30 }
  0xd8   : > { %v7361_v63 = vpop.permute.xlu1 %2423  ;;  %v2432_v9 = vpop.permute.xlu0 %2431 }
  0xd9   : > { %v2438_v10 = vsel %vm2437_vm8, %v2432_v9, %v2434_v58  ;;  %vm4918_vm8 = vcmask 384000  }
  0xda   : > { %6065 = vmatpush1.msk.msra.mxu0 %vm246_vm2, %v2438_v10 }
  0xdb   : > { %3550 = vrot.lane.b32.xlu1 %v7060_v5, %s6967_s30  ;;  %3548 = vrot.lane.b32.xlu0 %v7051_v4, %s6967_s30 }
  0xdc   : > { %6066 = vmatmul.mubr.msk.f32.vlgmr.msra.gmra.mrb[0].mxu0 %vm237_vm3, %v7361_v63  ;;  %v7370_v11 = vpop.permute.xlu1 %2425  ;;  %v630_v12 = vpop.permute.xlu0 %629 }
  0xdd   : > { %5981 = vmatmul.mubr.msk.f32.gmra.mrb[6].mxu1 %vm237_vm3, %v630_v12  ;;  %2524 = vmatprep.mubr.f32.mxu0 %v6943_v2 }
  0xde   : > { %6375 = vmatprep.mubr.msk.f32.mxu1 %vm237_vm3, %v624_v54 }
  0xdf   : > { %3552 = vrot.lane.b32.xlu1 %v7069_v6, %s6967_s30  ;;  %1529 = vrot.lane.b32.xlu0 %v7082_v7, %s6947_s25  ;;  %s6969_s25 = smov 64  }
  0xe0   : > { %6067 = vmatmul.mubr.msk.f32.gmra.mrb[2].mxu0 %vm237_vm3, %v7370_v11  ;;  %v859_v13 = vpop.permute.xlu1 %858  ;;  %v7381_v14 = vpop.permute.xlu0 %2427 }
  0xe1   : > { %6376 = vmatmul.mubr.msk.f32.vlgmr.msra.gmra.mrb[8].mxu1 %vm237_vm3, %v626_v56  ;;  %2530 = vmatprep.mubr.f32.mxu0 %v6943_v2 }
  0xe2   : > { %6378 = vmatprep.mubr.msk.f32.mxu1 %vm237_vm3, %v628_v60 }
  0xe3   : > { %3783 = vrot.lane.b32.xlu1 %v7044_v3, %s6968_s4  ;;  %3554 = vrot.lane.b32.xlu0 %v7082_v7, %s6967_s30  ;;  %s6981_s30 = smov 36  }
  0xe4   : > { %6068 = vmatmul.mubr.msk.f32.gmra.mrb[4].mxu0 %vm237_vm3, %v7381_v14  ;;  %v857_v16 = vpop.permute.xlu1 %856  ;;  %v861_v18 = vpop.permute.xlu0 %860 }
  0xe5   : > { %v863_v20 = vsel %vm862_vm9, %v857_v16, %v859_v13  ;;  %6379 = vmatmul.mubr.msk.f32.gmra.mrb[10].mxu1 %vm237_vm3, %v630_v12  ;;  %v864_v22 = vsel %vm862_vm9, %v859_v13, %v861_v18  ;;  %2536 = vmatprep.mubr.f32.mxu0 %v6943_v2  ;;  %vm5146_vm9 = vcmask 375808  }
  0xe6   : > { %5987 = vmatprep.subr.msk.mxu1 %vm246_vm2, %v864_v22  ;;  %943 = vmatprep.mubr.f32.mxu1 %v6943_v2 }
  0xe7   : > { %3781 = vrot.lane.b32.xlu1 %v7034_v1, %s6968_s4  ;;  %3785 = vrot.lane.b32.xlu0 %v7031_v0, %s6968_s4 }
  0xe8   : > { %5988 = vmatpush1.msk.msra.mxu1 %vm246_vm2, %v863_v20  ;;  %v2659_v24 = vpop.permute.xlu1 %2658  ;;  %v7398_v26 = vpop.permute.xlu0 %2429 }
  0xe9   : > { %6381 = vmatprep.subr.msk.mxu1 %vm246_vm2, %v861_v18  ;;  %6069 = vmatmul.mubr.msk.f32.gmra.mrb[6].mxu0 %vm237_vm3, %v7398_v26 }
  0xea   : > { %2743 = vmatprep.mubr.f32.mxu0 %v6943_v2 }
  0xeb   : > { %3775 = vrot.lane.b32.xlu1 %v7060_v5, %s6969_s25  ;;  %3773 = vrot.lane.b32.xlu0 %v7051_v4, %s6969_s25 }
  0xec   : > { %v849_v28 = vpop.permute.xlu1 %848  ;;  %v7408_v29 = vpop.permute.xlu0 %2660 }
  0xed   : > { %5989 = vmatmul.mubr.msk.f32.vlgmr.msra.gmra.mrb[0].mxu1 %vm237_vm3, %v849_v28  ;;  %v2664_v31 = vsel %vm2662_vm10, %v2659_v24, %v7408_v29 }
  0xee   : > { %6382 = vmatpush3.msk.msra.mxu1 %vm246_vm2, %v861_v18  ;;  %6075 = vmatprep.subr.msk.mxu0 %vm246_vm2, %v2664_v31 }
  0xef   : > { %3779 = vrot.lane.b32.xlu1 %v7082_v7, %s6969_s25  ;;  %3777 = vrot.lane.b32.xlu0 %v7069_v6, %s6969_s25 }
  0xf0   : > { %v7419_v35 = vpop.permute.xlu1 %2648  ;;  %v2657_v36 = vpop.permute.xlu0 %2656  ;;  %949 = vmatprep.mubr.f32.mxu1 %v6943_v2 }
  0xf1   : > { %v2663_v38 = vsel %vm2662_vm10, %v2657_v36, %v2659_v24  ;;  %vm5374_vm10 = vcmask 367616  }
  0xf2   : > { %6076 = vmatpush1.msk.msra.mxu0 %vm246_vm2, %v2663_v38 }
  0xf3   : > { %4010 = vrot.lane.b32.xlu1 %v7031_v0, %s6970_s5  ;;  %4008 = vrot.lane.b32.xlu0 %v7044_v3, %s6970_s5 }
  0xf4   : > { %6077 = vmatmul.mubr.msk.f32.vlgmr.msra.gmra.mrb[0].mxu0 %vm237_vm3, %v7419_v35  ;;  %v7428_v39 = vpop.permute.xlu1 %2650  ;;  %v851_v42 = vpop.permute.xlu0 %850 }
  0xf5   : > { %5990 = vmatmul.mubr.msk.f32.gmra.mrb[2].mxu1 %vm237_vm3, %v851_v42  ;;  %2749 = vmatprep.mubr.f32.mxu0 %v6943_v2 }
  0xf6   : > { %955 = vmatprep.mubr.f32.mxu1 %v6943_v2 }
  0xf7   : > { %3998 = vrot.lane.b32.xlu1 %v7051_v4, %s6971_s6  ;;  %4006 = vrot.lane.b32.xlu0 %v7034_v1, %s6970_s5 }
  0xf8   : > { %6078 = vmatmul.mubr.msk.f32.gmra.mrb[2].mxu0 %vm237_vm3, %v7428_v39  ;;  %v7437_v44 = vpop.permute.xlu1 %2652  ;;  %v853_v46 = vpop.permute.xlu0 %852 }
  0xf9   : > { %5991 = vmatmul.mubr.msk.f32.gmra.mrb[4].mxu1 %vm237_vm3, %v853_v46  ;;  %2755 = vmatprep.mubr.f32.mxu0 %v6943_v2 }
  0xfa   : > { %961 = vmatprep.mubr.f32.mxu1 %v6943_v2 }
  0xfb   : > { %4002 = vrot.lane.b32.xlu1 %v7069_v6, %s6971_s6  ;;  %4000 = vrot.lane.b32.xlu0 %v7060_v5, %s6971_s6 }
  0xfc   : > { %6079 = vmatmul.mubr.msk.f32.gmra.mrb[4].mxu0 %vm237_vm3, %v7437_v44  ;;  %v7446_v47 = vpop.permute.xlu1 %2654  ;;  %v855_v48 = vpop.permute.xlu0 %854 }
  0xfd   : > { %5992 = vmatmul.mubr.msk.f32.gmra.mrb[6].mxu1 %vm237_vm3, %v855_v48  ;;  %2761 = vmatprep.mubr.f32.mxu0 %v6943_v2 }
  0xfe   : > { %6383 = vmatprep.mubr.msk.f32.mxu1 %vm237_vm3, %v849_v28 }
  0xff   : > { %4233 = vrot.lane.b32.xlu1 %v7044_v3, %s6972_s7  ;;  %4004 = vrot.lane.b32.xlu0 %v7082_v7, %s6971_s6 }
 0x100   : > { %6080 = vmatmul.mubr.msk.f32.gmra.mrb[6].mxu0 %vm237_vm3, %v7446_v47  ;;  %v7455_v50 = vpop.permute.xlu1 %2885 }
 0x101   : > { %v2884_v51 = vpop.permute.xlu0 %2883  ;;  %6384 = vmatmul.mubr.msk.f32.vlgmr.msra.gmra.mrb[8].mxu1 %vm237_vm3, %v851_v42  ;;  %2968 = vmatprep.mubr.f32.mxu0 %v6943_v2 }
 0x102   : > { %6386 = vmatprep.mubr.msk.f32.mxu1 %vm237_vm3, %v853_v46  ;;  %v2889_v52 = vsel %vm2887_vm11, %v2884_v51, %v7455_v50 }
 0x103   : > { %4231 = vrot.lane.b32.xlu1 %v7034_v1, %s6972_s7  ;;  %4235 = vrot.lane.b32.xlu0 %v7031_v0, %s6972_s7 }
 0x104   : > { %6086 = vmatprep.subr.msk.mxu0 %vm246_vm2, %v2889_v52 }
 0x105   : > { %v7464_v53 = vpop.permute.xlu1 %2873  ;;  %v2882_v54 = vpop.permute.xlu0 %2881  ;;  %6387 = vmatmul.mubr.msk.f32.gmra.mrb[10].mxu1 %vm237_vm3, %v855_v48 }
 0x106   : > { %v2888_v56 = vsel %vm2887_vm11, %v2882_v54, %v2884_v51  ;;  %1168 = vmatprep.mubr.f32.mxu1 %v6943_v2  ;;  %vm5602_vm11 = vcmask 359424  }
 0x107   : > { %4225 = vrot.lane.b32.xlu1 %v7060_v5, %s6973_s8  ;;  %4223 = vrot.lane.b32.xlu0 %v7051_v4, %s6973_s8 }
 0x108   : > { %6087 = vmatpush1.msk.msra.mxu0 %vm246_vm2, %v2888_v56 }
 0x109   : > { %6088 = vmatmul.mubr.msk.f32.vlgmr.msra.gmra.mrb[0].mxu0 %vm237_vm3, %v7464_v53  ;;  %v1086_v58 = vpop.permute.xlu1 %1085  ;;  %v1084_v60 = vpop.permute.xlu0 %1083 }
 0x10a   : > { %v1089_v62 = vsel %vm1087_vm12, %v1084_v60, %v1086_v58  ;;  %2974 = vmatprep.mubr.f32.mxu0 %v6943_v2 }
 0x10b   : > { %4229 = vrot.lane.b32.xlu1 %v7082_v7, %s6973_s8  ;;  %4227 = vrot.lane.b32.xlu0 %v7069_v6, %s6973_s8 }
 0x10c   : > { %5998 = vmatprep.subr.msk.mxu1 %vm246_vm2, %v1089_v62 }
 0x10d   : > { %v7477_v9 = vpop.permute.xlu1 %2875  ;;  %v1082_v10 = vpop.permute.xlu0 %1081 }
 0x10e   : > { %v1088_v12 = vsel %vm1087_vm12, %v1082_v10, %v1084_v60  ;;  %6089 = vmatmul.mubr.msk.f32.gmra.mrb[2].mxu0 %vm237_vm3, %v7477_v9  ;;  %v7583_v10 = vld [vmem:[%s8173_s0 + $0x8] sm:$0xff] }
 0x10f   : > { %4460 = vrot.lane.b32.xlu1 %v7031_v0, %s6969_s25  ;;  %4458 = vrot.lane.b32.xlu0 %v7044_v3, %s6969_s25 }
 0x110   : > { %5999 = vmatpush1.msk.msra.mxu1 %vm246_vm2, %v1088_v12  ;;  %2980 = vmatprep.mubr.f32.mxu0 %v6943_v2 }
 0x111   : > { %6389 = vmatprep.subr.msk.mxu1 %vm246_vm2, %v1086_v58  ;;  %v7488_v13 = vpop.permute.xlu1 %2877  ;;  %v1074_v16 = vpop.permute.xlu0 %1073 }
 0x112   : > { %6000 = vmatmul.mubr.msk.f32.vlgmr.msra.gmra.mrb[0].mxu1 %vm237_vm3, %v1074_v16  ;;  %6090 = vmatmul.mubr.msk.f32.gmra.mrb[4].mxu0 %vm237_vm3, %v7488_v13 }
 0x113   : > { %6390 = vmatpush3.msk.msra.mxu1 %vm246_vm2, %v1086_v58  ;;  %4448 = vrot.lane.b32.xlu1 %v7051_v4, %s6974_s9  ;;  %v7576_v58 = vld [vmem:[%s8173_s0 + $0x10] sm:$0xff] }
 0x114   : > { %4456 = vrot.lane.b32.xlu0 %v7034_v1, %s6969_s25  ;;  %1174 = vmatprep.mubr.f32.mxu1 %v6943_v2 }
 0x115   : > { %v7498_v18 = vpop.permute.xlu1 %2879  ;;  %v1076_v20 = vpop.permute.xlu0 %1075  ;;  %2986 = vmatprep.mubr.f32.mxu0 %v6943_v2 }
 0x116   : > { %6001 = vmatmul.mubr.msk.f32.gmra.mrb[2].mxu1 %vm237_vm3, %v1076_v20  ;;  %6091 = vmatmul.mubr.msk.f32.gmra.mrb[6].mxu0 %vm237_vm3, %v7498_v18 }
 0x117   : > { %4452 = vrot.lane.b32.xlu1 %v7069_v6, %s6974_s9  ;;  %1180 = vmatprep.mubr.f32.mxu1 %v6943_v2 }
 0x118   : > { %4450 = vrot.lane.b32.xlu0 %v7060_v5, %s6974_s9  ;;  %3193 = vmatprep.mubr.f32.mxu0 %v6943_v2 }
 0x119   : > { %v7508_v22 = vpop.permute.xlu1 %3110  ;;  %v3109_v24 = vpop.permute.xlu0 %3108 }
 0x11a   : > { %v3114_v28 = vsel %vm3112_vm13, %v3109_v24, %v7508_v22 }
 0x11b   : > { %4684 = vrot.lane.b32.xlu1 %v7044_v3, %s6975_s10  ;;  %6097 = vmatprep.subr.msk.mxu0 %vm246_vm2, %v3114_v28 }
 0x11c   : > { %4454 = vrot.lane.b32.xlu0 %v7082_v7, %s6974_s9 }
 0x11d   : > { %v3107_v31 = vpop.permute.xlu1 %3106  ;;  %v1078_v36 = vpop.permute.xlu0 %1077 }
 0x11e   : > { %v3113_v38 = vsel %vm3112_vm13, %v3107_v31, %v3109_v24  ;;  %6002 = vmatmul.mubr.msk.f32.gmra.mrb[4].mxu1 %vm237_vm3, %v1078_v36  ;;  %v7595_v24 = vld [vmem:[%s8173_s0 + $0x18] sm:$0xff] }
 0x11f   : > { %4682 = vrot.lane.b32.xlu1 %v7034_v1, %s6975_s10  ;;  %6098 = vmatpush1.msk.msra.mxu0 %vm246_vm2, %v3113_v38 }
 0x120   : > { %4686 = vrot.lane.b32.xlu0 %v7031_v0, %s6975_s10  ;;  %1186 = vmatprep.mubr.f32.mxu1 %v6943_v2 }
 0x121   : > { %v1080_v42 = vpop.permute.xlu1 %1079  ;;  %v7522_v46 = vpop.permute.xlu0 %3098 }
 0x122   : > { %6003 = vmatmul.mubr.msk.f32.gmra.mrb[6].mxu1 %vm237_vm3, %v1080_v42  ;;  %6099 = vmatmul.mubr.msk.f32.vlgmr.msra.gmra.mrb[0].mxu0 %vm237_vm3, %v7522_v46 }
 0x123   : > { %4675 = vrot.lane.b32.xlu1 %v7060_v5, %s6975_s10  ;;  %6391 = vmatprep.mubr.msk.f32.mxu1 %vm237_vm3, %v1074_v16 }
 0x124   : > { %4673 = vrot.lane.b32.xlu0 %v7051_v4, %s6975_s10  ;;  %3199 = vmatprep.mubr.f32.mxu0 %v6943_v2 }
 0x125   : > { %v7533_v48 = vpop.permute.xlu1 %3102  ;;  %v7535_v51 = vpop.permute.xlu0 %3100 }
 0x126   : > { %6392 = vmatmul.mubr.msk.f32.vlgmr.msra.gmra.mrb[8].mxu1 %vm237_vm3, %v1076_v20  ;;  %6100 = vmatmul.mubr.msk.f32.gmra.mrb[2].mxu0 %vm237_vm3, %v7535_v51 }
 0x127   : > { %4679 = vrot.lane.b32.xlu1 %v7082_v7, %s6975_s10  ;;  %6394 = vmatprep.mubr.msk.f32.mxu1 %vm237_vm3, %v1078_v36 }
 0x128   : > { %4677 = vrot.lane.b32.xlu0 %v7069_v6, %s6975_s10  ;;  %3205 = vmatprep.mubr.f32.mxu0 %v6943_v2  ;;  %v7559_v6 = vld [vmem:[%s8173_s0] sm:$0xff] }
 0x129   : > { %v1311_v4 = vpop.permute.xlu1 %1310  ;;  %v1309_v5 = vpop.permute.xlu0 %1308 }
 0x12a   : > { %v1314_v52 = vsel %vm1312_vm14, %v1309_v5, %v1311_v4  ;;  %6395 = vmatmul.mubr.msk.f32.gmra.mrb[10].mxu1 %vm237_vm3, %v1080_v42  ;;  %6101 = vmatmul.mubr.msk.f32.gmra.mrb[4].mxu0 %vm237_vm3, %v7533_v48 }
 0x12b   : > { %4914 = vrot.lane.b32.xlu1 %v7031_v0, %s6976_s11  ;;  %6009 = vmatprep.subr.msk.mxu1 %vm246_vm2, %v1314_v52 }
 0x12c   : > { %4912 = vrot.lane.b32.xlu0 %v7044_v3, %s6976_s11  ;;  %3211 = vmatprep.mubr.f32.mxu0 %v6943_v2 }
 0x12d   : > { %v7561_v7 = vpop.permute.xlu1 %3104  ;;  %v1307_v54 = vpop.permute.xlu0 %1306  ;;  %1393 = vmatprep.mubr.f32.mxu1 %v6943_v2 }
 0x12e   : > { %v1313_v56 = vsel %vm1312_vm14, %v1307_v54, %v1309_v5  ;;  %6102 = vmatmul.mubr.msk.f32.gmra.mrb[6].mxu0 %vm237_vm3, %v7561_v7 }
 0x12f   : > { %4902 = vrot.lane.b32.xlu1 %v7559_v6, %s6977_s18  ;;  %6010 = vmatpush1.msk.msra.mxu1 %vm246_vm2, %v1313_v56 }
 0x130   : > { %4910 = vrot.lane.b32.xlu0 %v7034_v1, %s6976_s11  ;;  %6397 = vmatprep.subr.msk.mxu1 %vm246_vm2, %v1311_v4 }
 0x131   : > { %v7578_v60 = vpop.permute.xlu1 %3335  ;;  %v3334_v62 = vpop.permute.xlu0 %3333  ;;  %3418 = vmatprep.mubr.f32.mxu0 %v6943_v2 }
 0x132   : > { %v3339_v12 = vsel %vm3337_vm15, %v3334_v62, %v7578_v60 }
 0x133   : > { %4906 = vrot.lane.b32.xlu1 %v7576_v58, %s6977_s18  ;;  %6108 = vmatprep.subr.msk.mxu0 %vm246_vm2, %v3339_v12  ;;  %v6918_v12 = vld [vmem:[%s7028_s19] sm:$0xff] }
 0x134   : > { %4904 = vrot.lane.b32.xlu0 %v7583_v10, %s6977_s18 }
 0x135   : > { %v3332_v16 = vpop.permute.xlu1 %3331  ;;  %v1299_v20 = vpop.permute.xlu0 %1298 }
 0x136   : > { %v3338_v28 = vsel %vm3337_vm15, %v3332_v16, %v3334_v62  ;;  %6011 = vmatmul.mubr.msk.f32.vlgmr.msra.gmra.mrb[0].mxu1 %vm237_vm3, %v1299_v20 }
 0x137   : > { %6398 = vmatpush3.msk.msra.mxu1 %vm246_vm2, %v1311_v4  ;;  %5140 = vrot.lane.b32.xlu1 %v7044_v3, %s6978_s27 }
 0x138   : > { %4908 = vrot.lane.b32.xlu0 %v7595_v24, %s6977_s18  ;;  %6557 = vmatprep.subr.msk.mxu1 %vm246_vm2, %v7141_v15 }
 0x139   : > { %6109 = vmatpush1.msk.msra.mxu0 %vm246_vm2, %v3338_v28  ;;  %v1301_v31 = vpop.permute.xlu1 %1300  ;;  %1399 = vmatprep.mubr.f32.mxu1 %v6943_v2  ;;  %v7607_v36 = vpop.permute.xlu0 %3323 }
 0x13a   : > { %6012 = vmatmul.mubr.msk.f32.gmra.mrb[2].mxu1 %vm237_vm3, %v1301_v31  ;;  %6110 = vmatmul.mubr.msk.f32.vlgmr.msra.gmra.mrb[0].mxu0 %vm237_vm3, %v7607_v36 }
 0x13b   : > { %5138 = vrot.lane.b32.xlu1 %v7034_v1, %s6978_s27  ;;  %1405 = vmatprep.mubr.f32.mxu1 %v6943_v2 }
 0x13c   : > { %5142 = vrot.lane.b32.xlu0 %v7031_v0, %s6978_s27  ;;  %3424 = vmatprep.mubr.f32.mxu0 %v6943_v2  ;;  %v7628_v0 = vld [vmem:[%s7028_s19 + $0x8] sm:$0xff]  ;;  %s6982_s19 = smov 32  }
 0x13d   : > { %v1303_v15 = vpop.permute.xlu1 %1302  ;;  %v7618_v38 = vpop.permute.xlu0 %3325  ;;  %v7632_v1 = vcombine.high %v7628_v0, %v7628_v0 }
 0x13e   : > { %6013 = vmatmul.mubr.msk.f32.gmra.mrb[4].mxu1 %vm237_vm3, %v1303_v15  ;;  %6111 = vmatmul.mubr.msk.f32.gmra.mrb[2].mxu0 %vm237_vm3, %v7618_v38 }
 0x13f   : > { %5132 = vrot.lane.b32.xlu1 %v7583_v10, %s6979_s28  ;;  %1411 = vmatprep.mubr.f32.mxu1 %v6943_v2 }
 0x140   : > { %5130 = vrot.lane.b32.xlu0 %v7559_v6, %s6979_s28  ;;  %3430 = vmatprep.mubr.f32.mxu0 %v6943_v2 }
 0x141   : > { %v1305_v42 = vpop.permute.xlu1 %1304  ;;  %v7634_v4 = vpop.permute.xlu0 %3327 }
 0x142   : > { %6014 = vmatmul.mubr.msk.f32.gmra.mrb[6].mxu1 %vm237_vm3, %v1305_v42  ;;  %6112 = vmatmul.mubr.msk.f32.gmra.mrb[4].mxu0 %vm237_vm3, %v7634_v4 }
 0x143   : > { %5134 = vrot.lane.b32.xlu1 %v7576_v58, %s6979_s28  ;;  %6399 = vmatprep.mubr.msk.f32.mxu1 %vm237_vm3, %v1299_v20 }
 0x144   : > { %4688 = vrot.lane.b32.xlu0 %v7632_v1, %s6975_s10  ;;  %3436 = vmatprep.mubr.f32.mxu0 %v6943_v2 }
 0x145   : > { %v3559_v5 = vpop.permute.xlu1 %3558  ;;  %v7644_v52 = vpop.permute.xlu0 %3329 }
 0x146   : > { %6400 = vmatmul.mubr.msk.f32.vlgmr.msra.gmra.mrb[8].mxu1 %vm237_vm3, %v1301_v31  ;;  %6113 = vmatmul.mubr.msk.f32.gmra.mrb[6].mxu0 %vm237_vm3, %v7644_v52 }
 0x147   : > { %6558 = vmatpush1.msk.msra.mxu1 %vm246_vm2, %v7143_v17  ;;  %5368 = vrot.lane.b32.xlu1 %v7044_v3, %s6980_s29 }
 0x148   : > { %5136 = vrot.lane.b32.xlu0 %v7595_v24, %s6979_s28  ;;  %6402 = vmatprep.mubr.msk.f32.mxu1 %vm237_vm3, %v1303_v15 }
 0x149   : > { %6405 = vmatprep.subr.msk.mxu1 %vm246_vm2, %v7132_v8  ;;  %v3557_v54 = vpop.permute.xlu1 %3556  ;;  %v7657_v56 = vpop.permute.xlu0 %3560  ;;  %3643 = vmatprep.mubr.f32.mxu0 %v6943_v2 }
 0x14a   : > { %v3563_v62 = vsel %vm3562_vm0, %v3557_v54, %v3559_v5  ;;  %6403 = vmatmul.mubr.msk.f32.gmra.mrb[10].mxu1 %vm237_vm3, %v1305_v42  ;;  %v3564_v17 = vsel %vm3562_vm0, %v3559_v5, %v7657_v56 }
 0x14b   : > { %5366 = vrot.lane.b32.xlu1 %v6918_v12, %s6980_s29  ;;  %6119 = vmatprep.subr.msk.mxu0 %vm246_vm2, %v3564_v17  ;;  %v5807_v17 = vld [vmem:[%s8174_s1 + $0x8] sm:$0xff] }
 0x14c   : > { %5370 = vrot.lane.b32.xlu0 %v7628_v0, %s6980_s29  ;;  %6120 = vmatpush1.msk.msra.mxu0 %vm246_vm2, %v3563_v62  ;;  %v5806_v62 = vld [vmem:[%s8174_s1] sm:$0xff] }
 0x14d   : > { %v7668_v16 = vpop.permute.xlu1 %3550  ;;  %v7670_v20 = vpop.permute.xlu0 %3548  ;;  %1636 = vmatprep.mubr.f32.mxu1 %v6943_v2 }
 0x14e   : > { %6121 = vmatmul.mubr.msk.f32.vlgmr.msra.gmra.mrb[0].mxu0 %vm237_vm3, %v7670_v20 }
 0x14f   : > { %5358 = vrot.lane.b32.xlu1 %v7559_v6, %s6981_s30  ;;  %3649 = vmatprep.mubr.f32.mxu0 %v6943_v2 }
 0x150   : > { %4916 = vrot.lane.b32.xlu0 %v7632_v1, %s6976_s11  ;;  %s6847_s11 = smul.u32 96, %s8182_s12 }
 0x151   : > { %v7679_v28 = vpop.permute.xlu1 %3552  ;;  %v1530_v31 = vpop.permute.xlu0 %1529 }
 0x152   : > { %6025 = vmatmul.mubr.msk.f32.vlgmr.msra.gmra.mrb[6].mxu1 %vm237_vm3, %v1530_v31  ;;  %6122 = vmatmul.mubr.msk.f32.gmra.mrb[2].mxu0 %vm237_vm3, %v7668_v16 }
 0x153   : > { %6406 = vmatpush3.msk.msra.mxu1 %vm246_vm2, %v7132_v8  ;;  %5144 = vrot.lane.b32.xlu1 %v7632_v1, %s6978_s27 }
 0x154   : > { %5360 = vrot.lane.b32.xlu0 %v7583_v10, %s6981_s30  ;;  %6407 = vmatprep.mubr.msk.f32.mxu1 %vm237_vm3, %v7153_v19 }
 0x155   : > { %6413 = vmatprep.subr.msk.mxu1 %vm246_vm2, %v7186_v25  ;;  %v3784_v15 = vpop.permute.xlu1 %3783  ;;  %3655 = vmatprep.mubr.f32.mxu0 %v6943_v2  ;;  %v7694_v42 = vpop.permute.xlu0 %3554 }
 0x156   : > { %6408 = vmatmul.mubr.msk.f32.vlgmr.msra.gmra.mrb[8].mxu1 %vm237_vm3, %v7164_v21  ;;  %6123 = vmatmul.mubr.msk.f32.gmra.mrb[4].mxu0 %vm237_vm3, %v7679_v28 }
 0x157   : > { %6414 = vmatpush3.msk.msra.mxu1 %vm246_vm2, %v7186_v25  ;;  %5364 = vrot.lane.b32.xlu1 %v7595_v24, %s6981_s30 }
 0x158   : > { %5362 = vrot.lane.b32.xlu0 %v7576_v58, %s6981_s30  ;;  %6410 = vmatprep.mubr.msk.f32.mxu1 %vm237_vm3, %v7178_v23 }
 0x159   : > { %6421 = vmatprep.subr.msk.mxu1 %vm246_vm2, %v7229_v34  ;;  %v3782_v8 = vpop.permute.xlu1 %3781  ;;  %3661 = vmatprep.mubr.f32.mxu0 %v6943_v2  ;;  %v7709_v19 = vpop.permute.xlu0 %3785 }
 0x15a   : > { %v3788_v21 = vsel %vm3787_vm1, %v3782_v8, %v3784_v15  ;;  %6411 = vmatmul.mubr.msk.f32.gmra.mrb[10].mxu1 %vm237_vm3, %v1530_v31  ;;  %6124 = vmatmul.mubr.msk.f32.gmra.mrb[6].mxu0 %vm237_vm3, %v7694_v42  ;;  %v3789_v25 = vsel %vm3787_vm1, %v3784_v15, %v7709_v19 }
 0x15b   : > { %5598 = vrot.lane.b32.xlu1 %v7628_v0, %s6977_s18  ;;  %6415 = vmatprep.mubr.msk.f32.mxu1 %vm237_vm3, %v7197_v27 }
 0x15c   : > { %5596 = vrot.lane.b32.xlu0 %v7044_v3, %s6977_s18  ;;  %6130 = vmatprep.subr.msk.mxu0 %vm246_vm2, %v3789_v25 }
 0x15d   : > { %6131 = vmatpush1.msk.msra.mxu0 %vm246_vm2, %v3788_v21  ;;  %v7723_v23 = vpop.permute.xlu1 %3775  ;;  %3868 = vmatprep.mubr.f32.mxu0 %v6943_v2  ;;  %v7726_v5 = vpop.permute.xlu0 %3773 }
 0x15e   : > { %6416 = vmatmul.mubr.msk.f32.vlgmr.msra.gmra.mrb[8].mxu1 %vm237_vm3, %v7206_v30  ;;  %6132 = vmatmul.mubr.msk.f32.vlgmr.msra.gmra.mrb[0].mxu0 %vm237_vm3, %v7726_v5 }
 0x15f   : > { %6422 = vmatpush3.msk.msra.mxu1 %vm246_vm2, %v7229_v34  ;;  %5372 = vrot.lane.b32.xlu1 %v7632_v1, %s6980_s29 }
 0x160   : > { %5594 = vrot.lane.b32.xlu0 %v6918_v12, %s6977_s18  ;;  %6418 = vmatprep.mubr.msk.f32.mxu1 %vm237_vm3, %v7217_v33 }
 0x161   : > { %6429 = vmatprep.subr.msk.mxu1 %vm246_vm2, %v7283_v45  ;;  %v7741_v3 = vpop.permute.xlu1 %3779  ;;  %3874 = vmatprep.mubr.f32.mxu0 %v6943_v2  ;;  %v7744_v27 = vpop.permute.xlu0 %3777 }
 0x162   : > { %6419 = vmatmul.mubr.msk.f32.gmra.mrb[10].mxu1 %vm237_vm3, %v7215_v32  ;;  %6133 = vmatmul.mubr.msk.f32.gmra.mrb[2].mxu0 %vm237_vm3, %v7723_v23 }
 0x163   : > { %6423 = vmatprep.mubr.msk.f32.mxu1 %vm237_vm3, %v7244_v37  ;;  %3880 = vmatprep.mubr.f32.mxu0 %v6943_v2 }
 0x164   : > { %5586 = vrot.lane.b32.xlu0 %v7559_v6, %s6982_s19  ;;  %5588 = vrot.lane.b32.xlu1 %v7583_v10, %s6982_s19 }
 0x165   : > { %v7755_v30 = vpop.permute.xlu1 %4010  ;;  %v4009_v33 = vpop.permute.xlu0 %4008 }
 0x166   : > { %v4014_v32 = vsel %vm4012_vm4, %v4009_v33, %v7755_v30  ;;  %6424 = vmatmul.mubr.msk.f32.vlgmr.msra.gmra.mrb[8].mxu1 %vm237_vm3, %v7258_v41  ;;  %6134 = vmatmul.mubr.msk.f32.gmra.mrb[4].mxu0 %vm237_vm3, %v7744_v27 }
 0x167   : > { %6430 = vmatpush3.msk.msra.mxu1 %vm246_vm2, %v7283_v45  ;;  %6426 = vmatprep.mubr.msk.f32.mxu1 %vm237_vm3, %v7256_v40 }
 0x168   : > { %5600 = vrot.lane.b32.xlu0 %v7632_v1, %s6977_s18  ;;  %6437 = vmatprep.subr.msk.mxu1 %vm246_vm2, %v7350_v61  ;;  %s8146_s18 = scalar_lea.vmem %s8176_s3, %s6847_s11 }
 0x169   : > { %6141 = vmatprep.subr.msk.mxu0 %vm246_vm2, %v4014_v32  ;;  %v7772_v34 = vpop.permute.xlu1 %3998  ;;  %3886 = vmatprep.mubr.f32.mxu0 %v6943_v2  ;;  %v4007_v37 = vpop.permute.xlu0 %4006 }
 0x16a   : > { %v4013_v41 = vsel %vm4012_vm4, %v4007_v37, %v4009_v33  ;;  %6427 = vmatmul.mubr.msk.f32.gmra.mrb[10].mxu1 %vm237_vm3, %v7272_v43  ;;  %6135 = vmatmul.mubr.msk.f32.gmra.mrb[6].mxu0 %vm237_vm3, %v7741_v3 }
 0x16b   : > { %6431 = vmatprep.mubr.msk.f32.mxu1 %vm237_vm3, %v7298_v49  ;;  %6142 = vmatpush1.msk.msra.mxu0 %vm246_vm2, %v4013_v41 }
 0x16c   : > { %4093 = vmatprep.mubr.f32.mxu0 %v6943_v2  ;;  %5590 = vrot.lane.b32.xlu1 %v7576_v58, %s6982_s19 }
 0x16d   : > { %v7785_v40 = vpop.permute.xlu1 %4002  ;;  %v7787_v45 = vpop.permute.xlu0 %4000  ;;  %5592 = vrot.lane.b32.xlu0 %v7595_v24, %s6982_s19 }
 0x16e   : > { %6432 = vmatmul.mubr.msk.f32.vlgmr.msra.gmra.mrb[8].mxu1 %vm237_vm3, %v7321_v55  ;;  %6143 = vmatmul.mubr.msk.f32.vlgmr.msra.gmra.mrb[0].mxu0 %vm237_vm3, %v7772_v34 }
 0x16f   : > { %6438 = vmatpush3.msk.msra.mxu1 %vm246_vm2, %v7350_v61  ;;  %6434 = vmatprep.mubr.msk.f32.mxu1 %vm237_vm3, %v7332_v57 }
 0x170   : > { %6445 = vmatprep.subr.msk.mxu1 %vm246_vm2, %v7408_v29  ;;  %4099 = vmatprep.mubr.f32.mxu0 %v6943_v2 }
 0x171   : > { %v4234_v43 = vpop.permute.xlu1 %4233  ;;  %v7801_v49 = vpop.permute.xlu0 %4004 }
 0x172   : > { %6435 = vmatmul.mubr.msk.f32.gmra.mrb[10].mxu1 %vm237_vm3, %v7343_v59  ;;  %6144 = vmatmul.mubr.msk.f32.gmra.mrb[2].mxu0 %vm237_vm3, %v7787_v45 }
 0x173   : > { %6439 = vmatprep.mubr.msk.f32.mxu1 %vm237_vm3, %v7361_v63  ;;  %4105 = vmatprep.mubr.f32.mxu0 %v6943_v2 }
 0x175   : > { %v4232_v55 = vpop.permute.xlu1 %4231  ;;  %v7810_v57 = vpop.permute.xlu0 %4235 }
 0x176   : > { %v4238_v61 = vsel %vm4237_vm5, %v4232_v55, %v4234_v43  ;;  %6440 = vmatmul.mubr.msk.f32.vlgmr.msra.gmra.mrb[8].mxu1 %vm237_vm3, %v7370_v11  ;;  %6145 = vmatmul.mubr.msk.f32.gmra.mrb[4].mxu0 %vm237_vm3, %v7785_v40  ;;  %v4239_v59 = vsel %vm4237_vm5, %v4234_v43, %v7810_v57 }
 0x177   : > { %6446 = vmatpush3.msk.msra.mxu1 %vm246_vm2, %v7408_v29  ;;  %6442 = vmatprep.mubr.msk.f32.mxu1 %vm237_vm3, %v7381_v14 }
 0x178   : > { %6453 = vmatprep.subr.msk.mxu1 %vm246_vm2, %v7455_v50  ;;  %6152 = vmatprep.subr.msk.mxu0 %vm246_vm2, %v4239_v59 }
 0x179   : > { %6153 = vmatpush1.msk.msra.mxu0 %vm246_vm2, %v4238_v61  ;;  %v7825_v63 = vpop.permute.xlu1 %4225  ;;  %4111 = vmatprep.mubr.f32.mxu0 %v6943_v2  ;;  %v7828_v11 = vpop.permute.xlu0 %4223 }
 0x17a   : > { %6443 = vmatmul.mubr.msk.f32.gmra.mrb[10].mxu1 %vm237_vm3, %v7398_v26  ;;  %6146 = vmatmul.mubr.msk.f32.gmra.mrb[6].mxu0 %vm237_vm3, %v7801_v49 }
 0x17b   : > { %6447 = vmatprep.mubr.msk.f32.mxu1 %vm237_vm3, %v7419_v35  ;;  %4318 = vmatprep.mubr.f32.mxu0 %v6943_v2 }
 0x17d   : > { %v7837_v14 = vpop.permute.xlu1 %4229  ;;  %v7839_v29 = vpop.permute.xlu0 %4227 }
 0x17e   : > { %6448 = vmatmul.mubr.msk.f32.vlgmr.msra.gmra.mrb[8].mxu1 %vm237_vm3, %v7428_v39  ;;  %6154 = vmatmul.mubr.msk.f32.vlgmr.msra.gmra.mrb[0].mxu0 %vm237_vm3, %v7828_v11 }
 0x17f   : > { %6454 = vmatpush3.msk.msra.mxu1 %vm246_vm2, %v7455_v50  ;;  %6450 = vmatprep.mubr.msk.f32.mxu1 %vm237_vm3, %v7437_v44 }
 0x180   : > { %6461 = vmatprep.subr.msk.mxu1 %vm246_vm2, %v7508_v22  ;;  %4324 = vmatprep.mubr.f32.mxu0 %v6943_v2 }
 0x181   : > { %v7852_v26 = vpop.permute.xlu1 %4460  ;;  %v4459_v35 = vpop.permute.xlu0 %4458 }
 0x182   : > { %v4464_v39 = vsel %vm4462_vm6, %v4459_v35, %v7852_v26  ;;  %6451 = vmatmul.mubr.msk.f32.gmra.mrb[10].mxu1 %vm237_vm3, %v7446_v47  ;;  %6155 = vmatmul.mubr.msk.f32.gmra.mrb[2].mxu0 %vm237_vm3, %v7825_v63 }
 0x183   : > { %6455 = vmatprep.mubr.msk.f32.mxu1 %vm237_vm3, %v7464_v53  ;;  %4330 = vmatprep.mubr.f32.mxu0 %v6943_v2 }
 0x184   : > { %6163 = vmatprep.subr.msk.mxu0 %vm246_vm2, %v4464_v39 }
 0x185   : > { %v7864_v44 = vpop.permute.xlu1 %4448 }
 0x186   : > { %v4457_v50 = vpop.permute.xlu0 %4456  ;;  %6456 = vmatmul.mubr.msk.f32.vlgmr.msra.gmra.mrb[8].mxu1 %vm237_vm3, %v7477_v9  ;;  %6156 = vmatmul.mubr.msk.f32.gmra.mrb[4].mxu0 %vm237_vm3, %v7839_v29 }
 0x187   : > { %v4463_v47 = vsel %vm4462_vm6, %v4457_v50, %v4459_v35  ;;  %6462 = vmatpush3.msk.msra.mxu1 %vm246_vm2, %v7508_v22  ;;  %6458 = vmatprep.mubr.msk.f32.mxu1 %vm237_vm3, %v7488_v13 }
 0x188   : > { %6469 = vmatprep.subr.msk.mxu1 %vm246_vm2, %v7578_v60  ;;  %6164 = vmatpush1.msk.msra.mxu0 %vm246_vm2, %v4463_v47 }
 0x189   : > { %v7878_v53 = vpop.permute.xlu1 %4452  ;;  %4336 = vmatprep.mubr.f32.mxu0 %v6943_v2 }
 0x18a   : > { %v7881_v9 = vpop.permute.xlu0 %4450  ;;  %6459 = vmatmul.mubr.msk.f32.gmra.mrb[10].mxu1 %vm237_vm3, %v7498_v18  ;;  %6157 = vmatmul.mubr.msk.f32.gmra.mrb[6].mxu0 %vm237_vm3, %v7837_v14 }
 0x18b   : > { %6463 = vmatprep.mubr.msk.f32.mxu1 %vm237_vm3, %v7522_v46  ;;  %4543 = vmatprep.mubr.f32.mxu0 %v6943_v2 }
 0x18d   : > { %v4685_v13 = vpop.permute.xlu1 %4684 }
 0x18e   : > { %v7890_v22 = vpop.permute.xlu0 %4454  ;;  %6464 = vmatmul.mubr.msk.f32.vlgmr.msra.gmra.mrb[8].mxu1 %vm237_vm3, %v7535_v51  ;;  %6165 = vmatmul.mubr.msk.f32.vlgmr.msra.gmra.mrb[0].mxu0 %vm237_vm3, %v7864_v44 }
 0x18f   : > { %6470 = vmatpush3.msk.msra.mxu1 %vm246_vm2, %v7578_v60  ;;  %6466 = vmatprep.mubr.msk.f32.mxu1 %vm237_vm3, %v7533_v48 }
 0x190   : > { %6477 = vmatprep.subr.msk.mxu1 %vm246_vm2, %v7657_v56  ;;  %4549 = vmatprep.mubr.f32.mxu0 %v6943_v2 }
 0x191   : > { %v4683_v18 = vpop.permute.xlu1 %4682 }
 0x192   : > { %v4691_v46 = vsel %vm4690_vm7, %v4683_v18, %v4685_v13  ;;  %v7904_v6 = vpop.permute.xlu0 %4686  ;;  %6467 = vmatmul.mubr.msk.f32.gmra.mrb[10].mxu1 %vm237_vm3, %v7561_v7  ;;  %6166 = vmatmul.mubr.msk.f32.gmra.mrb[2].mxu0 %vm237_vm3, %v7881_v9 }
 0x193   : > { %v4692_v48 = vsel %vm4690_vm7, %v4685_v13, %v7904_v6  ;;  %6471 = vmatprep.mubr.msk.f32.mxu1 %vm237_vm3, %v7607_v36  ;;  %4555 = vmatprep.mubr.f32.mxu0 %v6943_v2 }
 0x194   : > { %6174 = vmatprep.subr.msk.mxu0 %vm246_vm2, %v4692_v48 }
 0x195   : > { %v7916_v51 = vpop.permute.xlu1 %4675  ;;  %6175 = vmatpush1.msk.msra.mxu0 %vm246_vm2, %v4691_v46 }
 0x196   : > { %v7919_v58 = vpop.permute.xlu0 %4673  ;;  %6472 = vmatmul.mubr.msk.f32.vlgmr.msra.gmra.mrb[8].mxu1 %vm237_vm3, %v7618_v38  ;;  %6167 = vmatmul.mubr.msk.f32.gmra.mrb[4].mxu0 %vm237_vm3, %v7878_v53 }
 0x197   : > { %6478 = vmatpush3.msk.msra.mxu1 %vm246_vm2, %v7657_v56  ;;  %6474 = vmatprep.mubr.msk.f32.mxu1 %vm237_vm3, %v7634_v4  ;;  %v6983_v56 = vmov 0  }
 0x198   : > { %6485 = vmatprep.subr.msk.mxu1 %vm246_vm2, %v7709_v19  ;;  %4561 = vmatprep.mubr.f32.mxu0 %v6943_v2 }
 0x199   : > { %v7932_v7 = vpop.permute.xlu1 %4679  ;;  %6913 = vset.pattern.permute.xlu1 %v6983_v56  ;;  %6914 = vset.pattern.permute.xlu0 %v6983_v56 }
 0x19a   : > { %v7934_v60 = vpop.permute.xlu0 %4677  ;;  %6475 = vmatmul.mubr.msk.f32.gmra.mrb[10].mxu1 %vm237_vm3, %v7644_v52  ;;  %6168 = vmatmul.mubr.msk.f32.gmra.mrb[6].mxu0 %vm237_vm3, %v7890_v22 }
 0x19b   : > { %6479 = vmatprep.mubr.msk.f32.mxu1 %vm237_vm3, %v7670_v20  ;;  %4772 = vmatprep.mubr.f32.mxu0 %v6943_v2 }
 0x19c   : > { %5812 = vperm.xlu1 %6913, %v5806_v62   ;;  %5817 = vperm.xlu0 %6914, %v5807_v17  }
 0x19d   : > { %v7943_v10 = vpop.permute.xlu1 %4914 }
 0x19e   : > { %v4913_v24 = vpop.permute.xlu0 %4912  ;;  %6480 = vmatmul.mubr.msk.f32.vlgmr.msra.gmra.mrb[8].mxu1 %vm237_vm3, %v7668_v16  ;;  %6176 = vmatmul.mubr.msk.f32.vlgmr.msra.gmra.mrb[0].mxu0 %vm237_vm3, %v7919_v58 }
 0x19f   : > { %v4920_v36 = vsel %vm4918_vm8, %v4913_v24, %v7943_v10  ;;  %6486 = vmatpush3.msk.msra.mxu1 %vm246_vm2, %v7709_v19  ;;  %6482 = vmatprep.mubr.msk.f32.mxu1 %vm237_vm3, %v7679_v28  ;;  %v5808_v28 = vld [vmem:[%s8174_s1 + $0x10] sm:$0xff]  ;;  %v5809_v19 = vld [vmem:[%s8174_s1 + $0x18] sm:$0xff] }
 0x1a0   : > { %6493 = vmatprep.subr.msk.mxu1 %vm246_vm2, %v7755_v30  ;;  %4778 = vmatprep.mubr.f32.mxu0 %v6943_v2 }
 0x1a1   : > { %v7958_v38 = vpop.permute.xlu1 %4902  ;;  %6185 = vmatprep.subr.msk.mxu0 %vm246_vm2, %v4920_v36  ;;  %5822 = vperm.xlu1 %6913, %v5808_v28  }
 0x1a2   : > { %v4911_v0 = vpop.permute.xlu0 %4910  ;;  %6483 = vmatmul.mubr.msk.f32.gmra.mrb[10].mxu1 %vm237_vm3, %v7694_v42  ;;  %6177 = vmatmul.mubr.msk.f32.gmra.mrb[2].mxu0 %vm237_vm3, %v7916_v51 }
 0x1a3   : > { %v4919_v1 = vsel %vm4918_vm8, %v4911_v0, %v4913_v24  ;;  %6487 = vmatprep.mubr.msk.f32.mxu1 %vm237_vm3, %v7726_v5  ;;  %4784 = vmatprep.mubr.f32.mxu0 %v6943_v2 }
 0x1a4   : > { %6186 = vmatpush1.msk.msra.mxu0 %vm246_vm2, %v4919_v1 }
 0x1a5   : > { %v7970_v4 = vpop.permute.xlu1 %4906  ;;  %5827 = vperm.xlu1 %6913, %v5809_v19  }
 0x1a6   : > { %v7972_v52 = vpop.permute.xlu0 %4904  ;;  %6488 = vmatmul.mubr.msk.f32.vlgmr.msra.gmra.mrb[8].mxu1 %vm237_vm3, %v7723_v23  ;;  %6178 = vmatmul.mubr.msk.f32.gmra.mrb[4].mxu0 %vm237_vm3, %v7934_v60 }
 0x1a7   : > { %6494 = vmatpush3.msk.msra.mxu1 %vm246_vm2, %v7755_v30  ;;  %6490 = vmatprep.mubr.msk.f32.mxu1 %vm237_vm3, %v7744_v27 }
 0x1a8   : > { %6501 = vmatprep.subr.msk.mxu1 %vm246_vm2, %v7810_v57  ;;  %4790 = vmatprep.mubr.f32.mxu0 %v6943_v2 }
 0x1a9   : > { %v5141_v54 = vpop.permute.xlu1 %5140 }
 0x1aa   : > { %v7991_v12 = vpop.permute.xlu0 %4908  ;;  %6491 = vmatmul.mubr.msk.f32.gmra.mrb[10].mxu1 %vm237_vm3, %v7741_v3  ;;  %6179 = vmatmul.mubr.msk.f32.gmra.mrb[6].mxu0 %vm237_vm3, %v7932_v7 }
 0x1ab   : > { %6495 = vmatprep.mubr.msk.f32.mxu1 %vm237_vm3, %v7772_v34  ;;  %5000 = vmatprep.mubr.f32.mxu0 %v6943_v2 }
 0x1ad   : > { %v5139_v16 = vpop.permute.xlu1 %5138 }
 0x1ae   : > { %v5143_v20 = vpop.permute.xlu0 %5142  ;;  %6496 = vmatmul.mubr.msk.f32.vlgmr.msra.gmra.mrb[8].mxu1 %vm237_vm3, %v7787_v45  ;;  %6187 = vmatmul.mubr.msk.f32.vlgmr.msra.gmra.mrb[0].mxu0 %vm237_vm3, %v7958_v38  ;;  %v5147_v15 = vsel %vm5146_vm9, %v5139_v16, %v5141_v54 }
 0x1af   : > { %v5148_v31 = vsel %vm5146_vm9, %v5141_v54, %v5143_v20  ;;  %6502 = vmatpush3.msk.msra.mxu1 %vm246_vm2, %v7810_v57  ;;  %6498 = vmatprep.mubr.msk.f32.mxu1 %vm237_vm3, %v7785_v40 }
 0x1b0   : > { %6509 = vmatprep.subr.msk.mxu1 %vm246_vm2, %v7852_v26  ;;  %5006 = vmatprep.mubr.f32.mxu0 %v6943_v2 }
 0x1b1   : > { %v8016_v42 = vpop.permute.xlu1 %5132  ;;  %6196 = vmatprep.subr.msk.mxu0 %vm246_vm2, %v5148_v31 }
 0x1b2   : > { %v8019_v8 = vpop.permute.xlu0 %5130  ;;  %6499 = vmatmul.mubr.msk.f32.gmra.mrb[10].mxu1 %vm237_vm3, %v7801_v49  ;;  %6188 = vmatmul.mubr.msk.f32.gmra.mrb[2].mxu0 %vm237_vm3, %v7972_v52 }
 0x1b3   : > { %6503 = vmatprep.mubr.msk.f32.mxu1 %vm237_vm3, %v7828_v11  ;;  %5012 = vmatprep.mubr.f32.mxu0 %v6943_v2 }
 0x1b4   : > { %6197 = vmatpush1.msk.msra.mxu0 %vm246_vm2, %v5147_v15 }
 0x1b5   : > { %v8032_v21 = vpop.permute.xlu1 %5134 }
 0x1b6   : > { %v4689_v25 = vpop.permute.xlu0 %4688  ;;  %6504 = vmatmul.mubr.msk.f32.vlgmr.msra.gmra.mrb[8].mxu1 %vm237_vm3, %v7825_v63  ;;  %6189 = vmatmul.mubr.msk.f32.gmra.mrb[4].mxu0 %vm237_vm3, %v7970_v4 }
 0x1b7   : > { %v4693_v23 = vsel %vm4690_vm7, %v7904_v6, %v4689_v25  ;;  %6510 = vmatpush3.msk.msra.mxu1 %vm246_vm2, %v7852_v26  ;;  %6506 = vmatprep.mubr.msk.f32.mxu1 %vm237_vm3, %v7839_v29 }
 0x1b8   : > { %6517 = vmatprep.subr.msk.mxu1 %vm246_vm2, %v4693_v23  ;;  %5018 = vmatprep.mubr.f32.mxu0 %v6943_v2 }
 0x1b9   : > { %v5369_v5 = vpop.permute.xlu1 %5368 }
 0x1ba   : > { %v8046_v3 = vpop.permute.xlu0 %5136  ;;  %6507 = vmatmul.mubr.msk.f32.gmra.mrb[10].mxu1 %vm237_vm3, %v7837_v14  ;;  %6190 = vmatmul.mubr.msk.f32.gmra.mrb[6].mxu0 %vm237_vm3, %v7991_v12 }
 0x1bb   : > { %6511 = vmatprep.mubr.msk.f32.mxu1 %vm237_vm3, %v7864_v44  ;;  %5228 = vmatprep.mubr.f32.mxu0 %v6943_v2 }
 0x1bd   : > { %v5367_v27 = vpop.permute.xlu1 %5366 }
 0x1be   : > { %v5375_v30 = vsel %vm5374_vm10, %v5367_v27, %v5369_v5  ;;  %v5371_v33 = vpop.permute.xlu0 %5370  ;;  %6512 = vmatmul.mubr.msk.f32.vlgmr.msra.gmra.mrb[8].mxu1 %vm237_vm3, %v7881_v9  ;;  %6198 = vmatmul.mubr.msk.f32.vlgmr.msra.gmra.mrb[0].mxu0 %vm237_vm3, %v8019_v8 }
 0x1bf   : > { %v5376_v32 = vsel %vm5374_vm10, %v5369_v5, %v5371_v33  ;;  %6518 = vmatpush3.msk.msra.mxu1 %vm246_vm2, %v4693_v23  ;;  %6514 = vmatprep.mubr.msk.f32.mxu1 %vm237_vm3, %v7878_v53 }
 0x1c0   : > { %5234 = vmatprep.mubr.f32.mxu0 %v6943_v2  ;;  %6207 = vmatprep.subr.msk.mxu0 %vm246_vm2, %v5376_v32 }
 0x1c1   : > { %v5359_v34 = vpop.permute.xlu1 %5358  ;;  %6208 = vmatpush1.msk.msra.mxu0 %vm246_vm2, %v5375_v30 }
 0x1c2   : > { %v4917_v37 = vpop.permute.xlu0 %4916  ;;  %6515 = vmatmul.mubr.msk.f32.gmra.mrb[10].mxu1 %vm237_vm3, %v7890_v22  ;;  %6199 = vmatmul.mubr.msk.f32.gmra.mrb[2].mxu0 %vm237_vm3, %v8016_v42 }
 0x1c3   : > { %v4921_v41 = vsel %vm4918_vm8, %v7943_v10, %v4917_v37  ;;  %6519 = vmatprep.mubr.msk.f32.mxu1 %vm237_vm3, %v7919_v58  ;;  %5240 = vmatprep.mubr.f32.mxu0 %v6943_v2 }
 0x1c4   : > { %6525 = vmatprep.subr.msk.mxu1 %vm246_vm2, %v4921_v41 }
 0x1c5   : > { %v5145_v40 = vpop.permute.xlu1 %5144 }
 0x1c6   : > { %v5149_v45 = vsel %vm5146_vm9, %v5143_v20, %v5145_v40  ;;  %v5361_v43 = vpop.permute.xlu0 %5360  ;;  %6520 = vmatmul.mubr.msk.f32.vlgmr.msra.gmra.mrb[8].mxu1 %vm237_vm3, %v7916_v51  ;;  %6200 = vmatmul.mubr.msk.f32.gmra.mrb[4].mxu0 %vm237_vm3, %v8032_v21 }
 0x1c7   : > { %6526 = vmatpush3.msk.msra.mxu1 %vm246_vm2, %v4921_v41  ;;  %6522 = vmatprep.mubr.msk.f32.mxu1 %vm237_vm3, %v7934_v60 }
 0x1c8   : > { %6533 = vmatprep.subr.msk.mxu1 %vm246_vm2, %v5149_v45  ;;  %5246 = vmatprep.mubr.f32.mxu0 %v6943_v2 }
 0x1c9   : > { %v5365_v49 = vpop.permute.xlu1 %5364 }
 0x1ca   : > { %v5363_v55 = vpop.permute.xlu0 %5362  ;;  %6523 = vmatmul.mubr.msk.f32.gmra.mrb[10].mxu1 %vm237_vm3, %v7932_v7  ;;  %6201 = vmatmul.mubr.msk.f32.gmra.mrb[6].mxu0 %vm237_vm3, %v8046_v3 }
 0x1cb   : > { %6527 = vmatprep.mubr.msk.f32.mxu1 %vm237_vm3, %v7958_v38  ;;  %5456 = vmatprep.mubr.f32.mxu0 %v6943_v2 }
 0x1cd   : > { %v5599_v57 = vpop.permute.xlu1 %5598 }
 0x1ce   : > { %v5597_v61 = vpop.permute.xlu0 %5596  ;;  %6528 = vmatmul.mubr.msk.f32.vlgmr.msra.gmra.mrb[8].mxu1 %vm237_vm3, %v7972_v52  ;;  %6209 = vmatmul.mubr.msk.f32.vlgmr.msra.gmra.mrb[0].mxu0 %vm237_vm3, %v5359_v34 }
 0x1cf   : > { %v5604_v59 = vsel %vm5602_vm11, %v5597_v61, %v5599_v57  ;;  %6534 = vmatpush3.msk.msra.mxu1 %vm246_vm2, %v5149_v45  ;;  %6530 = vmatprep.mubr.msk.f32.mxu1 %vm237_vm3, %v7970_v4 }
 0x1d0   : > { %5462 = vmatprep.mubr.f32.mxu0 %v6943_v2  ;;  %6218 = vmatprep.subr.msk.mxu0 %vm246_vm2, %v5604_v59 }
 0x1d1   : > { %v5373_v63 = vpop.permute.xlu1 %5372 }
 0x1d2   : > { %v5377_v11 = vsel %vm5374_vm10, %v5371_v33, %v5373_v63  ;;  %v5595_v14 = vpop.permute.xlu0 %5594  ;;  %6531 = vmatmul.mubr.msk.f32.gmra.mrb[10].mxu1 %vm237_vm3, %v7991_v12  ;;  %6210 = vmatmul.mubr.msk.f32.gmra.mrb[2].mxu0 %vm237_vm3, %v5361_v43 }
 0x1d3   : > { %v5603_v29 = vsel %vm5602_vm11, %v5595_v14, %v5597_v61  ;;  %6535 = vmatprep.mubr.msk.f32.mxu1 %vm237_vm3, %v8019_v8  ;;  %6541 = vmatprep.subr.msk.mxu1 %vm246_vm2, %v5377_v11 }
 0x1d4   : > { %5468 = vmatprep.mubr.f32.mxu0 %v6943_v2  ;;  %6219 = vmatpush1.msk.msra.mxu0 %vm246_vm2, %v5603_v29 }
 0x1d6   : > { %v5587_v26 = vpop.permute.xlu0 %5586  ;;  %6536 = vmatmul.mubr.msk.f32.vlgmr.msra.gmra.mrb[8].mxu1 %vm237_vm3, %v8016_v42  ;;  %6211 = vmatmul.mubr.msk.f32.gmra.mrb[4].mxu0 %vm237_vm3, %v5363_v55  ;;  %v5589_v44 = vpop.permute.xlu1 %5588 }
 0x1d7   : > { %6542 = vmatpush3.msk.msra.mxu1 %vm246_vm2, %v5377_v11  ;;  %6538 = vmatprep.mubr.msk.f32.mxu1 %vm237_vm3, %v8032_v21 }
 0x1d8   : > { %5474 = vmatprep.mubr.f32.mxu0 %v6943_v2 }
 0x1da   : > { %v5601_v35 = vpop.permute.xlu0 %5600  ;;  %6539 = vmatmul.mubr.msk.f32.gmra.mrb[10].mxu1 %vm237_vm3, %v8046_v3  ;;  %6212 = vmatmul.mubr.msk.f32.gmra.mrb[6].mxu0 %vm237_vm3, %v5365_v49 }
 0x1db   : > { %v5605_v39 = vsel %vm5602_vm11, %v5599_v57, %v5601_v35  ;;  %6543 = vmatprep.mubr.msk.f32.mxu1 %vm237_vm3, %v5359_v34  ;;  %5684 = vmatprep.mubr.f32.mxu0 %v6943_v2 }
 0x1dc   : > { %6549 = vmatprep.subr.msk.mxu1 %vm246_vm2, %v5605_v39 }
 0x1de   : > { %6544 = vmatmul.mubr.msk.f32.vlgmr.msra.gmra.mrb[8].mxu1 %vm237_vm3, %v5361_v43  ;;  %6220 = vmatmul.mubr.msk.f32.vlgmr.msra.gmra.mrb[0].mxu0 %vm237_vm3, %v5587_v26  ;;  %v5591_v50 = vpop.permute.xlu1 %5590 }
 0x1df   : > { %6550 = vmatpush3.msk.msra.mxu1 %vm246_vm2, %v5605_v39  ;;  %6546 = vmatprep.mubr.msk.f32.mxu1 %vm237_vm3, %v5363_v55  ;;  %v5593_v47 = vpop.permute.xlu0 %5592 }
 0x1e0   : > { %5690 = vmatprep.mubr.f32.mxu0 %v6943_v2 }
 0x1e2   : > { %6547 = vmatmul.mubr.msk.f32.gmra.mrb[10].mxu1 %vm237_vm3, %v5365_v49  ;;  %6221 = vmatmul.mubr.msk.f32.gmra.mrb[2].mxu0 %vm237_vm3, %v5589_v44 }
 0x1e3   : > { %5696 = vmatprep.mubr.f32.mxu0 %v6943_v2  ;;  %6551 = vmatprep.mubr.msk.f32.mxu1 %vm237_vm3, %v5587_v26 }
 0x1e6   : > { %6222 = vmatmul.mubr.msk.f32.gmra.mrb[4].mxu0 %vm237_vm3, %v5591_v50  ;;  %6552 = vmatmul.mubr.msk.f32.vlgmr.msra.gmra.mrb[8].mxu1 %vm237_vm3, %v5589_v44 }
 0x1e7   : > { %5702 = vmatprep.mubr.f32.mxu0 %v6943_v2  ;;  %6554 = vmatprep.mubr.msk.f32.mxu1 %vm237_vm3, %v5591_v50 }
 0x1ea   : > { %6223 = vmatmul.mubr.msk.f32.gmra.mrb[6].mxu0 %vm237_vm3, %v5593_v47  ;;  %6555 = vmatmul.mubr.msk.f32.gmra.mrb[10].mxu1 %vm237_vm3, %v5593_v47 }
 0x209   : > { %v1395_v53 = vpop.f32.mrb[0].mxu1 }
 0x20a   : > { %v1397_v9 = vpop.f32.mrb[1].mxu1 }
 0x20d   : > { %v1401_v13 = vpop.f32.mrb[2].mxu1 }
 0x20e   : > { %v1403_v22 = vpop.f32.mrb[3].mxu1 }
 0x211   : > { %v1407_v18 = vpop.f32.mrb[4].mxu1 }
 0x212   : > { %v1409_v46 = vpop.f32.mrb[5].mxu1 }
 0x21b   : > { %v5813_v51 = vpop.permute.xlu1 %5812  ;;  %v5818_v38 = vpop.permute.xlu0 %5817 }
 0x220   : > { %v5823_v4 = vpop.permute.xlu1 %5822 }
 0x224   : > { %v5828_v8 = vpop.permute.xlu1 %5827 }
 0x225   : > { %v1638_v6 = vpop.f32.mrb[6].mxu1 }
 0x226   : > { %v1640_v48 = vpop.f32.mrb[7].mxu1 }
 0x2b1   : > { %v5686_v58 = vpop.f32.mrb[0].mxu0 }
 0x2b2   : > { %v6559_v7 = vadd.f32 %v5686_v58, %v1395_v53  ;;  %v5688_v2 = vpop.f32.mrb[1].mxu0 }
 0x2b3   : > { %v6560_v60 = vadd.f32 %v5688_v2, %v1397_v9 }
 0x2b4   : > { %v5830_v10 = vadd.f32 %v6559_v7, %v5813_v51 }
 0x2b5   : > { %v5831_v24 = vadd.f32 %v6560_v60, %v5813_v51  ;;  %v5692_v36 = vpop.f32.mrb[2].mxu0 }
 0x2b6   : > { %5842 = vst [vmem:[%s8146_s18] sm:$0xff] %v5830_v10  ;;  %v6561_v0 = vadd.f32 %v5692_v36, %v1401_v13  ;;  %v5694_v1 = vpop.f32.mrb[3].mxu0 }
 0x2b7   : > { %5843 = vst [vmem:[%s8146_s18 + $0x8] sm:$0xff] %v5831_v24  ;;  %v6562_v52 = vadd.f32 %v5694_v1, %v1403_v22 }
 0x2b8   : > { %v5833_v54 = vadd.f32 %v6561_v0, %v5818_v38 }
 0x2b9   : > { %v5834_v56 = vadd.f32 %v6562_v52, %v5818_v38  ;;  %v5698_v62 = vpop.f32.mrb[4].mxu0  ;;  %v6553_v17 = vpop.f32.mrb[8].mxu1 }
 0x2ba   : > { %5845 = vst [vmem:[%s8146_s18 + $0x18] sm:$0xff] %v5833_v54  ;;  %v6563_v12 = vadd.f32 %v5698_v62, %v1407_v18  ;;  %v5835_v16 = vadd.f32 %v6553_v17, %v5818_v38  ;;  %v5700_v20 = vpop.f32.mrb[5].mxu0  ;;  %v5775_v28 = vpop.f32.mrb[9].mxu1 }
 0x2bb   : > { %5846 = vst [vmem:[%s8146_s18 + $0x20] sm:$0xff] %v5834_v56  ;;  %v6564_v31 = vadd.f32 %v5700_v20, %v1409_v46  ;;  %v5832_v15 = vadd.f32 %v5813_v51, %v5775_v28 }
 0x2bc   : > { %v5836_v42 = vadd.f32 %v6563_v12, %v5823_v4  ;;  %5847 = vst.msk [vmem:[%s8146_s18 + $0x28] sm:$0xff] %vm4462_vm6, %v5835_v16 }
 0x2bd   : > { %v5837_v19 = vadd.f32 %v6564_v31, %v5823_v4  ;;  %5844 = vst.msk [vmem:[%s8146_s18 + $0x10] sm:$0xff] %vm4462_vm6, %v5832_v15  ;;  %v5704_v21 = vpop.f32.mrb[6].mxu0  ;;  %v6556_v25 = vpop.f32.mrb[10].mxu1 }
 0x2be   : > { %5848 = vst [vmem:[%s8146_s18 + $0x30] sm:$0xff] %v5836_v42  ;;  %v6565_v23 = vadd.f32 %v5704_v21, %v1638_v6  ;;  %v5841_v5 = vadd.f32 %v6556_v25, %v5828_v8  ;;  %v5706_v3 = vpop.f32.mrb[7].mxu0  ;;  %v5785_v27 = vpop.f32.mrb[11].mxu1 }
 0x2bf   : > { %5849 = vst [vmem:[%s8146_s18 + $0x38] sm:$0xff] %v5837_v19  ;;  %v6566_v30 = vadd.f32 %v5706_v3, %v1640_v48  ;;  %v5838_v33 = vadd.f32 %v5823_v4, %v5785_v27 }
 0x2c0   : > { %v5839_v32 = vadd.f32 %v6565_v23, %v5828_v8  ;;  %5853 = vst.msk [vmem:[%s8146_s18 + $0x58] sm:$0xff] %vm4462_vm6, %v5841_v5 }
 0x2c1   : > { %v5840_v34 = vadd.f32 %v6566_v30, %v5828_v8  ;;  %5850 = vst.msk [vmem:[%s8146_s18 + $0x40] sm:$0xff] %vm4462_vm6, %v5838_v33 }
 0x2c2   : > { %5851 = vst [vmem:[%s8146_s18 + $0x48] sm:$0xff] %v5839_v32 }
 0x2c3   : > { %5852 = vst [vmem:[%s8146_s18 + $0x50] sm:$0xff] %v5840_v34 }
 0x2c4 PF: > { %s13_s14 = sadd.s32 1, %s6941_s14   ;;  %s8177_s12 = smov %s6937_s13 }
 0x2c5   : > { %p10_p5 = scmp.ge.s32.totalorder %s13_s14, 4   ;;  %s8178_s13 = smov %s8180_s15 }
 0x2c7   :  { %12 = sbr.rel (!%p10_p5) target bundleno = 2 (0x2), region = 62 }

</bundles_post_ra>
